<compile_context>
chip_gen: v6e
topology: v6e:2x2x1
jax: 0.10.0
libtpu: 0.0.40
codegen_flags: <defaults>
</compile_context>

<pallas_src>
import math
import jax
import jax.numpy as jnp
from jax.experimental import pallas as pl
from jax.experimental.pallas import tpu as pltpu

HEADS = 4


def _feature_encoder_kernel(x_ref, wqkv_ref, bqkv_ref, wo_ref, bo_ref, out_ref):
    # x_ref:    (BT, S, Din)   tile of batch rows
    # wqkv_ref: (Din, 3M) = [Wq*scale | Wk | Wv],   bqkv_ref: (1, 3M)
    # wo_ref:   (M, M),                              bo_ref:   (1, M)
    # out_ref:  (BT, M)
    BT, S, Din = x_ref.shape
    M = wo_ref.shape[0]
    dh = M // HEADS

    # Fused QKV projection: one MXU pass over (BT*S, Din) rows, 3M output lanes.
    x2 = x_ref[...].reshape(BT * S, Din)
    qkv = jnp.dot(x2, wqkv_ref[...],
                  preferred_element_type=jnp.float32) + bqkv_ref[...]        # (BT*S, 3M)

    q = qkv[:, 0 * M:1 * M].reshape(BT, S, M)     # softmax scale already folded into Wq/bq
    k = qkv[:, 1 * M:2 * M].reshape(BT, S, M)
    v = qkv[:, 2 * M:3 * M].reshape(BT, S, M)

    # Per-head attention.  mean_q(softmax(S) @ V) == (mean_q softmax(S)) @ V, so
    # only the per-batch mean row of the softmax matrix ever multiplies V.
    head_means = []
    for h in range(HEADS):                        # static unroll over heads
        lo = h * dh
        qh = q[:, :, lo:lo + dh]                  # (BT, S, dh)
        kh = k[:, :, lo:lo + dh]
        vh = v[:, :, lo:lo + dh]
        # Batched scores, contraction on the last dims (no kh.T transpose).
        s = jnp.einsum("bqd,bkd->bqk", qh, kh,
                       preferred_element_type=jnp.float32)                   # (BT, S, S)
        s = s - jnp.max(s, axis=-1, keepdims=True)
        p = jnp.exp(s)
        l = jnp.sum(p, axis=-1, keepdims=True)                               # (BT, S, 1)
        pm = jnp.mean(p / l, axis=1, keepdims=True)                          # (BT, 1, S)
        head_means.append(
            jnp.einsum("bqk,bkd->bqd", pm, vh,
                       preferred_element_type=jnp.float32))                  # (BT, 1, dh)

    att_mean = jnp.concatenate(head_means, axis=-1).reshape(BT, M)           # (BT, M)

    # Output projection applied to the sequence mean (linearity of the mean).
    out_ref[...] = jnp.dot(att_mean, wo_ref[...],
                           preferred_element_type=jnp.float32) + bo_ref[...]


def feature_encoder(x, params, *, b_tile=8):
    """x: (B, S, video_dim) float32 -> (B, m_dim) float32.

    b_tile: batch rows processed per grid step (raise for large B; the per-step
    VMEM footprint is tiny for typical video_dim/m_dim).
    """
    B, S, Din = x.shape
    M = params["wq"].shape[1]
    dh = M // HEADS
    scale = 1.0 / math.sqrt(dh)

    # Host-side packing: fused QKV weight/bias with the softmax scale folded in.
    wqkv = jnp.concatenate(
        [params["wq"] * scale, params["wk"], params["wv"]], axis=1)          # (Din, 3M)
    bqkv = jnp.concatenate(
        [params["bq"] * scale, params["bk"], params["bv"]], axis=1)          # (1, 3M)

    bt = max(1, min(b_tile, B))
    bp = ((B + bt - 1) // bt) * bt
    if bp != B:                                   # pad batch to a multiple of bt
        x = jnp.concatenate([x, jnp.zeros((bp - B, S, Din), x.dtype)], axis=0)

    w_spec = lambda shape: pl.BlockSpec(shape, lambda b: (0, 0))

    out = pl.pallas_call(
        _feature_encoder_kernel,
        out_shape=jax.ShapeDtypeStruct((bp, M), jnp.float32),
        grid_spec=pltpu.PrefetchScalarGridSpec(
            num_scalar_prefetch=0,
            grid=(bp // bt,),
            in_specs=[
                pl.BlockSpec((bt, S, Din), lambda b: (b, 0, 0)),   # x tile
                w_spec((Din, 3 * M)), w_spec((1, 3 * M)),          # fused Wqkv, bqkv
                w_spec((M, M)), w_spec((1, M)),                    # Wo, bo
            ],
            out_specs=pl.BlockSpec((bt, M), lambda b: (b, 0)),
        ),
        compiler_params=pltpu.CompilerParams(dimension_semantics=("parallel",)),
    )(x, wqkv, bqkv, params["wo"], params["bo"])
    return out[:B]


def feature_encoder_ref(x, params):
    """Pure-JAX reference (standard MHA + mean over sequence)."""
    q = x @ params["wq"] + params["bq"]
    k = x @ params["wk"] + params["bk"]
    v = x @ params["wv"] + params["bv"]
    B, S, M = q.shape
    dh = M // HEADS
    scale = 1.0 / math.sqrt(dh)
    qh = q.reshape(B, S, HEADS, dh)
    kh = k.reshape(B, S, HEADS, dh)
    vh = v.reshape(B, S, HEADS, dh)
    s = jnp.einsum("bqhd,bkhd->bhqk", qh, kh) * scale
    p = jax.nn.softmax(s, axis=-1)
    o = jnp.einsum("bhqk,bkhd->bqhd", p, vh).reshape(B, S, M)
    o = o @ params["wo"] + params["bo"]
    return o.mean(axis=-2)


def init_params(key, video_dim, m_dim):
    ks = jax.random.split(key, 8)
    std = 0.02
    return {
        "wq": jax.random.normal(ks[0], (video_dim, m_dim), jnp.float32) * std,
        "bq": jax.random.normal(ks[1], (1, m_dim), jnp.float32) * std,
        "wk": jax.random.normal(ks[2], (video_dim, m_dim), jnp.float32) * std,
        "bk": jax.random.normal(ks[3], (1, m_dim), jnp.float32) * std,
        "wv": jax.random.normal(ks[4], (video_dim, m_dim), jnp.float32) * std,
        "bv": jax.random.normal(ks[5], (1, m_dim), jnp.float32) * std,
        "wo": jax.random.normal(ks[6], (m_dim, m_dim), jnp.float32) * std,
        "bo": jax.random.normal(ks[7], (1, m_dim), jnp.float32) * std,
    }


if __name__ == "__main__":
    B, S, VIDEO_DIM, DIM = 16, 8, 32, 32      # heads=4 -> head_dim=8; grid has 2 steps

    key = jax.random.PRNGKey(0)
    k_x, k_p = jax.random.split(key)
    x = jax.random.normal(k_x, (B, S, VIDEO_DIM), jnp.float32)
    params = init_params(k_p, VIDEO_DIM, DIM)

    out = jax.block_until_ready(feature_encoder(x, params, b_tile=8))
    ref = feature_encoder_ref(x, params)

    assert out.shape == (B, DIM)
    assert jnp.allclose(out, ref, atol=1e-4, rtol=1e-4), "mismatch vs JAX reference"

    print("KERNEL_OK")
</pallas_src>

<mosaic_0001>
module attributes {stable_mosaic.version = 11 : i64} {
  func.func @_feature_encoder_kernel(%arg0: i32, %arg1: memref<8x8x32xf32, #tpu.memory_space<vmem>>, %arg2: memref<32x96xf32, #tpu.memory_space<vmem>>, %arg3: memref<1x96xf32, #tpu.memory_space<vmem>>, %arg4: memref<32x32xf32, #tpu.memory_space<vmem>>, %arg5: memref<1x32xf32, #tpu.memory_space<vmem>>, %arg6: memref<8x32xf32, #tpu.memory_space<vmem>>) attributes {dimension_semantics = [#tpu.dimension_semantics<parallel>], iteration_bounds = array<i64: 2>, scalar_prefetch = 0 : i64, scratch_operands = 0 : i64, tpu.core_type = #tpu.core_type<tc>, window_params = [{transform_indices = @transform_0, window_bounds = array<i64: 8, 8, 32>}, {pipeline_mode = #tpu.pipeline_mode<synchronous>, transform_indices = @transform_1, window_bounds = array<i64: 32, 96>}, {pipeline_mode = #tpu.pipeline_mode<synchronous>, transform_indices = @transform_2, window_bounds = array<i64: 1, 96>}, {pipeline_mode = #tpu.pipeline_mode<synchronous>, transform_indices = @transform_3, window_bounds = array<i64: 32, 32>}, {pipeline_mode = #tpu.pipeline_mode<synchronous>, transform_indices = @transform_4, window_bounds = array<i64: 1, 32>}, {transform_indices = @transform_5, window_bounds = array<i64: 8, 32>}]} {
    %c0 = arith.constant 0 : index
    %c0_0 = arith.constant 0 : index
    %c0_1 = arith.constant 0 : index
    %0 = vector.load %arg1[%c0, %c0_0, %c0_1] : memref<8x8x32xf32, #tpu.memory_space<vmem>>, vector<8x8x32xf32>
    %1 = vector.shape_cast %0 : vector<8x8x32xf32> to vector<64x32xf32>
    %c0_2 = arith.constant 0 : index
    %c0_3 = arith.constant 0 : index
    %2 = vector.load %arg2[%c0_2, %c0_3] : memref<32x96xf32, #tpu.memory_space<vmem>>, vector<32x96xf32>
    %cst = arith.constant dense<0.000000e+00> : vector<64x96xf32>
    %3 = tpu.matmul %1, %2, %cst {dimension_numbers = #tpu.dot_dimension_numbers<[1], [0], [0], [1], [0, 0, 1, 1], [], []>} : vector<64x32xf32>, vector<32x96xf32>, vector<64x96xf32> -> vector<64x96xf32>
    %c0_4 = arith.constant 0 : index
    %c0_5 = arith.constant 0 : index
    %4 = vector.load %arg3[%c0_4, %c0_5] : memref<1x96xf32, #tpu.memory_space<vmem>>, vector<1x96xf32>
    %5 = vector.broadcast %4 : vector<1x96xf32> to vector<64x96xf32>
    %6 = arith.addf %3, %5 : vector<64x96xf32>
    %7 = vector.extract_strided_slice %6 {offsets = [0, 0], sizes = [64, 32], strides = [1, 1]} : vector<64x96xf32> to vector<64x32xf32>
    %8 = vector.shape_cast %7 : vector<64x32xf32> to vector<8x8x32xf32>
    %9 = vector.extract_strided_slice %6 {offsets = [0, 32], sizes = [64, 32], strides = [1, 1]} : vector<64x96xf32> to vector<64x32xf32>
    %10 = vector.shape_cast %9 : vector<64x32xf32> to vector<8x8x32xf32>
    %11 = vector.extract_strided_slice %6 {offsets = [0, 64], sizes = [64, 32], strides = [1, 1]} : vector<64x96xf32> to vector<64x32xf32>
    %12 = vector.shape_cast %11 : vector<64x32xf32> to vector<8x8x32xf32>
    %13 = vector.extract_strided_slice %8 {offsets = [0, 0, 0], sizes = [8, 8, 8], strides = [1, 1, 1]} : vector<8x8x32xf32> to vector<8x8x8xf32>
    %14 = vector.extract_strided_slice %10 {offsets = [0, 0, 0], sizes = [8, 8, 8], strides = [1, 1, 1]} : vector<8x8x32xf32> to vector<8x8x8xf32>
    %15 = vector.extract_strided_slice %12 {offsets = [0, 0, 0], sizes = [8, 8, 8], strides = [1, 1, 1]} : vector<8x8x32xf32> to vector<8x8x8xf32>
    "tpu.trace_start"() <{level = 10 : i32, message = "bqd,bkd->bqk"}> : () -> ()
    %cst_6 = arith.constant dense<0.000000e+00> : vector<8x8x8xf32>
    %16 = tpu.matmul %13, %14, %cst_6 {dimension_numbers = #tpu.dot_dimension_numbers<[2], [2], [1], [1], [0, 0, 0, 1, 1, 1], [0], [0]>} : vector<8x8x8xf32>, vector<8x8x8xf32>, vector<8x8x8xf32> -> vector<8x8x8xf32>
    "tpu.trace_stop"() : () -> ()
    %cst_7 = arith.constant dense<0xFF800000> : vector<8x8xf32>
    %17 = vector.multi_reduction <maximumf>, %16, %cst_7 [2] : vector<8x8x8xf32> to vector<8x8xf32>
    %18 = vector.shape_cast %17 : vector<8x8xf32> to vector<8x8x1xf32>
    %19 = vector.broadcast %18 : vector<8x8x1xf32> to vector<8x8x8xf32>
    %20 = arith.subf %16, %19 : vector<8x8x8xf32>
    %21 = math.exp %20 : vector<8x8x8xf32>
    %cst_8 = arith.constant dense<0.000000e+00> : vector<8x8xf32>
    %22 = vector.multi_reduction <add>, %21, %cst_8 [2] : vector<8x8x8xf32> to vector<8x8xf32>
    %23 = vector.shape_cast %22 : vector<8x8xf32> to vector<8x8x1xf32>
    %24 = vector.broadcast %23 : vector<8x8x1xf32> to vector<8x8x8xf32>
    %25 = arith.divf %21, %24 : vector<8x8x8xf32>
    %cst_9 = arith.constant dense<0.000000e+00> : vector<8x8xf32>
    %26 = vector.multi_reduction <add>, %25, %cst_9 [1] : vector<8x8x8xf32> to vector<8x8xf32>
    %27 = vector.shape_cast %26 : vector<8x8xf32> to vector<8x1x8xf32>
    %cst_10 = arith.constant 8.000000e+00 : f32
    %28 = vector.broadcast %cst_10 : f32 to vector<8x1x8xf32>
    %29 = arith.divf %27, %28 : vector<8x1x8xf32>
    "tpu.trace_start"() <{level = 10 : i32, message = "bqk,bkd->bqd"}> : () -> ()
    %cst_11 = arith.constant dense<0.000000e+00> : vector<8x1x8xf32>
    %30 = tpu.matmul %29, %15, %cst_11 {dimension_numbers = #tpu.dot_dimension_numbers<[2], [1], [1], [2], [0, 0, 0, 1, 1, 2], [0], [0]>} : vector<8x1x8xf32>, vector<8x8x8xf32>, vector<8x1x8xf32> -> vector<8x1x8xf32>
    "tpu.trace_stop"() : () -> ()
    %31 = vector.extract_strided_slice %8 {offsets = [0, 0, 8], sizes = [8, 8, 8], strides = [1, 1, 1]} : vector<8x8x32xf32> to vector<8x8x8xf32>
    %32 = vector.extract_strided_slice %10 {offsets = [0, 0, 8], sizes = [8, 8, 8], strides = [1, 1, 1]} : vector<8x8x32xf32> to vector<8x8x8xf32>
    %33 = vector.extract_strided_slice %12 {offsets = [0, 0, 8], sizes = [8, 8, 8], strides = [1, 1, 1]} : vector<8x8x32xf32> to vector<8x8x8xf32>
    "tpu.trace_start"() <{level = 10 : i32, message = "bqd,bkd->bqk"}> : () -> ()
    %cst_12 = arith.constant dense<0.000000e+00> : vector<8x8x8xf32>
    %34 = tpu.matmul %31, %32, %cst_12 {dimension_numbers = #tpu.dot_dimension_numbers<[2], [2], [1], [1], [0, 0, 0, 1, 1, 1], [0], [0]>} : vector<8x8x8xf32>, vector<8x8x8xf32>, vector<8x8x8xf32> -> vector<8x8x8xf32>
    "tpu.trace_stop"() : () -> ()
    %cst_13 = arith.constant dense<0xFF800000> : vector<8x8xf32>
    %35 = vector.multi_reduction <maximumf>, %34, %cst_13 [2] : vector<8x8x8xf32> to vector<8x8xf32>
    %36 = vector.shape_cast %35 : vector<8x8xf32> to vector<8x8x1xf32>
    %37 = vector.broadcast %36 : vector<8x8x1xf32> to vector<8x8x8xf32>
    %38 = arith.subf %34, %37 : vector<8x8x8xf32>
    %39 = math.exp %38 : vector<8x8x8xf32>
    %cst_14 = arith.constant dense<0.000000e+00> : vector<8x8xf32>
    %40 = vector.multi_reduction <add>, %39, %cst_14 [2] : vector<8x8x8xf32> to vector<8x8xf32>
    %41 = vector.shape_cast %40 : vector<8x8xf32> to vector<8x8x1xf32>
    %42 = vector.broadcast %41 : vector<8x8x1xf32> to vector<8x8x8xf32>
    %43 = arith.divf %39, %42 : vector<8x8x8xf32>
    %cst_15 = arith.constant dense<0.000000e+00> : vector<8x8xf32>
    %44 = vector.multi_reduction <add>, %43, %cst_15 [1] : vector<8x8x8xf32> to vector<8x8xf32>
    %45 = vector.shape_cast %44 : vector<8x8xf32> to vector<8x1x8xf32>
    %cst_16 = arith.constant 8.000000e+00 : f32
    %46 = vector.broadcast %cst_16 : f32 to vector<8x1x8xf32>
    %47 = arith.divf %45, %46 : vector<8x1x8xf32>
    "tpu.trace_start"() <{level = 10 : i32, message = "bqk,bkd->bqd"}> : () -> ()
    %cst_17 = arith.constant dense<0.000000e+00> : vector<8x1x8xf32>
    %48 = tpu.matmul %47, %33, %cst_17 {dimension_numbers = #tpu.dot_dimension_numbers<[2], [1], [1], [2], [0, 0, 0, 1, 1, 2], [0], [0]>} : vector<8x1x8xf32>, vector<8x8x8xf32>, vector<8x1x8xf32> -> vector<8x1x8xf32>
    "tpu.trace_stop"() : () -> ()
    %49 = vector.extract_strided_slice %8 {offsets = [0, 0, 16], sizes = [8, 8, 8], strides = [1, 1, 1]} : vector<8x8x32xf32> to vector<8x8x8xf32>
    %50 = vector.extract_strided_slice %10 {offsets = [0, 0, 16], sizes = [8, 8, 8], strides = [1, 1, 1]} : vector<8x8x32xf32> to vector<8x8x8xf32>
    %51 = vector.extract_strided_slice %12 {offsets = [0, 0, 16], sizes = [8, 8, 8], strides = [1, 1, 1]} : vector<8x8x32xf32> to vector<8x8x8xf32>
    "tpu.trace_start"() <{level = 10 : i32, message = "bqd,bkd->bqk"}> : () -> ()
    %cst_18 = arith.constant dense<0.000000e+00> : vector<8x8x8xf32>
    %52 = tpu.matmul %49, %50, %cst_18 {dimension_numbers = #tpu.dot_dimension_numbers<[2], [2], [1], [1], [0, 0, 0, 1, 1, 1], [0], [0]>} : vector<8x8x8xf32>, vector<8x8x8xf32>, vector<8x8x8xf32> -> vector<8x8x8xf32>
    "tpu.trace_stop"() : () -> ()
    %cst_19 = arith.constant dense<0xFF800000> : vector<8x8xf32>
    %53 = vector.multi_reduction <maximumf>, %52, %cst_19 [2] : vector<8x8x8xf32> to vector<8x8xf32>
    %54 = vector.shape_cast %53 : vector<8x8xf32> to vector<8x8x1xf32>
    %55 = vector.broadcast %54 : vector<8x8x1xf32> to vector<8x8x8xf32>
    %56 = arith.subf %52, %55 : vector<8x8x8xf32>
    %57 = math.exp %56 : vector<8x8x8xf32>
    %cst_20 = arith.constant dense<0.000000e+00> : vector<8x8xf32>
    %58 = vector.multi_reduction <add>, %57, %cst_20 [2] : vector<8x8x8xf32> to vector<8x8xf32>
    %59 = vector.shape_cast %58 : vector<8x8xf32> to vector<8x8x1xf32>
    %60 = vector.broadcast %59 : vector<8x8x1xf32> to vector<8x8x8xf32>
    %61 = arith.divf %57, %60 : vector<8x8x8xf32>
    %cst_21 = arith.constant dense<0.000000e+00> : vector<8x8xf32>
    %62 = vector.multi_reduction <add>, %61, %cst_21 [1] : vector<8x8x8xf32> to vector<8x8xf32>
    %63 = vector.shape_cast %62 : vector<8x8xf32> to vector<8x1x8xf32>
    %cst_22 = arith.constant 8.000000e+00 : f32
    %64 = vector.broadcast %cst_22 : f32 to vector<8x1x8xf32>
    %65 = arith.divf %63, %64 : vector<8x1x8xf32>
    "tpu.trace_start"() <{level = 10 : i32, message = "bqk,bkd->bqd"}> : () -> ()
    %cst_23 = arith.constant dense<0.000000e+00> : vector<8x1x8xf32>
    %66 = tpu.matmul %65, %51, %cst_23 {dimension_numbers = #tpu.dot_dimension_numbers<[2], [1], [1], [2], [0, 0, 0, 1, 1, 2], [0], [0]>} : vector<8x1x8xf32>, vector<8x8x8xf32>, vector<8x1x8xf32> -> vector<8x1x8xf32>
    "tpu.trace_stop"() : () -> ()
    %67 = vector.extract_strided_slice %8 {offsets = [0, 0, 24], sizes = [8, 8, 8], strides = [1, 1, 1]} : vector<8x8x32xf32> to vector<8x8x8xf32>
    %68 = vector.extract_strided_slice %10 {offsets = [0, 0, 24], sizes = [8, 8, 8], strides = [1, 1, 1]} : vector<8x8x32xf32> to vector<8x8x8xf32>
    %69 = vector.extract_strided_slice %12 {offsets = [0, 0, 24], sizes = [8, 8, 8], strides = [1, 1, 1]} : vector<8x8x32xf32> to vector<8x8x8xf32>
    "tpu.trace_start"() <{level = 10 : i32, message = "bqd,bkd->bqk"}> : () -> ()
    %cst_24 = arith.constant dense<0.000000e+00> : vector<8x8x8xf32>
    %70 = tpu.matmul %67, %68, %cst_24 {dimension_numbers = #tpu.dot_dimension_numbers<[2], [2], [1], [1], [0, 0, 0, 1, 1, 1], [0], [0]>} : vector<8x8x8xf32>, vector<8x8x8xf32>, vector<8x8x8xf32> -> vector<8x8x8xf32>
    "tpu.trace_stop"() : () -> ()
    %cst_25 = arith.constant dense<0xFF800000> : vector<8x8xf32>
    %71 = vector.multi_reduction <maximumf>, %70, %cst_25 [2] : vector<8x8x8xf32> to vector<8x8xf32>
    %72 = vector.shape_cast %71 : vector<8x8xf32> to vector<8x8x1xf32>
    %73 = vector.broadcast %72 : vector<8x8x1xf32> to vector<8x8x8xf32>
    %74 = arith.subf %70, %73 : vector<8x8x8xf32>
    %75 = math.exp %74 : vector<8x8x8xf32>
    %cst_26 = arith.constant dense<0.000000e+00> : vector<8x8xf32>
    %76 = vector.multi_reduction <add>, %75, %cst_26 [2] : vector<8x8x8xf32> to vector<8x8xf32>
    %77 = vector.shape_cast %76 : vector<8x8xf32> to vector<8x8x1xf32>
    %78 = vector.broadcast %77 : vector<8x8x1xf32> to vector<8x8x8xf32>
    %79 = arith.divf %75, %78 : vector<8x8x8xf32>
    %cst_27 = arith.constant dense<0.000000e+00> : vector<8x8xf32>
    %80 = vector.multi_reduction <add>, %79, %cst_27 [1] : vector<8x8x8xf32> to vector<8x8xf32>
    %81 = vector.shape_cast %80 : vector<8x8xf32> to vector<8x1x8xf32>
    %cst_28 = arith.constant 8.000000e+00 : f32
    %82 = vector.broadcast %cst_28 : f32 to vector<8x1x8xf32>
    %83 = arith.divf %81, %82 : vector<8x1x8xf32>
    "tpu.trace_start"() <{level = 10 : i32, message = "bqk,bkd->bqd"}> : () -> ()
    %cst_29 = arith.constant dense<0.000000e+00> : vector<8x1x8xf32>
    %84 = tpu.matmul %83, %69, %cst_29 {dimension_numbers = #tpu.dot_dimension_numbers<[2], [1], [1], [2], [0, 0, 0, 1, 1, 2], [0], [0]>} : vector<8x1x8xf32>, vector<8x8x8xf32>, vector<8x1x8xf32> -> vector<8x1x8xf32>
    "tpu.trace_stop"() : () -> ()
    %85 = tpu.concatenate %30, %48, %66, %84 in 2 : vector<8x1x8xf32>, vector<8x1x8xf32>, vector<8x1x8xf32>, vector<8x1x8xf32> -> vector<8x1x32xf32>
    %86 = vector.shape_cast %85 : vector<8x1x32xf32> to vector<8x32xf32>
    %c0_30 = arith.constant 0 : index
    %c0_31 = arith.constant 0 : index
    %87 = vector.load %arg4[%c0_30, %c0_31] : memref<32x32xf32, #tpu.memory_space<vmem>>, vector<32x32xf32>
    %cst_32 = arith.constant dense<0.000000e+00> : vector<8x32xf32>
    %88 = tpu.matmul %86, %87, %cst_32 {dimension_numbers = #tpu.dot_dimension_numbers<[1], [0], [0], [1], [0, 0, 1, 1], [], []>} : vector<8x32xf32>, vector<32x32xf32>, vector<8x32xf32> -> vector<8x32xf32>
    %c0_33 = arith.constant 0 : index
    %c0_34 = arith.constant 0 : index
    %89 = vector.load %arg5[%c0_33, %c0_34] : memref<1x32xf32, #tpu.memory_space<vmem>>, vector<1x32xf32>
    %90 = vector.broadcast %89 : vector<1x32xf32> to vector<8x32xf32>
    %91 = arith.addf %88, %90 : vector<8x32xf32>
    %c0_35 = arith.constant 0 : index
    %c0_36 = arith.constant 0 : index
    %92 = vector.load %arg6[%c0_35, %c0_36] : memref<8x32xf32, #tpu.memory_space<vmem>>, vector<8x32xf32>
    tpu.vector_store %arg6[%c0_35, %c0_36], %91 {strides = array<i32>} : memref<8x32xf32, #tpu.memory_space<vmem>>, vector<8x32xf32>,
    return
  }
  func.func @transform_0(%arg0: i32) -> (i32, i32, i32) {
    %c0_i32 = arith.constant 0 : i32
    %c0_i32_0 = arith.constant 0 : i32
    %c0_i32_1 = arith.constant 0 : i32
    return %arg0, %c0_i32, %c0_i32_0 : i32, i32, i32
  }
  func.func @transform_1(%arg0: i32) -> (i32, i32) {
    %c0_i32 = arith.constant 0 : i32
    %c0_i32_0 = arith.constant 0 : i32
    %c0_i32_1 = arith.constant 0 : i32
    return %c0_i32, %c0_i32_0 : i32, i32
  }
  func.func @transform_2(%arg0: i32) -> (i32, i32) {
    %c0_i32 = arith.constant 0 : i32
    %c0_i32_0 = arith.constant 0 : i32
    %c0_i32_1 = arith.constant 0 : i32
    return %c0_i32, %c0_i32_0 : i32, i32
  }
  func.func @transform_3(%arg0: i32) -> (i32, i32) {
    %c0_i32 = arith.constant 0 : i32
    %c0_i32_0 = arith.constant 0 : i32
    %c0_i32_1 = arith.constant 0 : i32
    return %c0_i32, %c0_i32_0 : i32, i32
  }
  func.func @transform_4(%arg0: i32) -> (i32, i32) {
    %c0_i32 = arith.constant 0 : i32
    %c0_i32_0 = arith.constant 0 : i32
    %c0_i32_1 = arith.constant 0 : i32
    return %c0_i32, %c0_i32_0 : i32, i32
  }
  func.func @transform_5(%arg0: i32) -> (i32, i32) {
    %c0_i32 = arith.constant 0 : i32
    %c0_i32_0 = arith.constant 0 : i32
    return %arg0, %c0_i32 : i32, i32
  }
}

</mosaic_0001>

<bundles_post_ra>
// kernel: tpu_custom_call.1
= control target key start
LH: loop header
LB: loop body
LE: loop exit
PB: predicated region body
PF: predicated region fallthrough
CT: control target
= control target key end

     0   :  { %10 = vsyncpa [#allocation3], 0  ;;  %s8385_s0 = inlined_call_operand.hbm [shape: f32[16,8,32], index: 0, kind: input, shape index: {}]   ;;  %s8386_s1 = inlined_call_operand.hbm [shape: f32[32,96], index: 1, kind: input, shape index: {}]   ;;  %s8387_s2 = inlined_call_operand.vmem [shape: f32[1,96], index: 2, kind: input, shape index: {}]   ;;  %s8388_s3 = inlined_call_operand.hbm [shape: f32[32,32], index: 3, kind: input, shape index: {}]   ;;  %s8389_s4 = inlined_call_operand.vmem [shape: f32[1,32], index: 4, kind: input, shape index: {}]   ;;  %s8390_s5 = inlined_call_operand.hbm [shape: f32[16,32], index: 5, kind: output, shape index: {}]  }
   0x1   :  { %12 = vsyncpa [#allocation3 + $0x1], 0 }
   0x2   :  { %13 = vsyncpa [#allocation6], 0 }
   0x3   :  { %14 = vsyncpa [#allocation4], 0 }
   0x4   :  { %16 = vsyncpa [#allocation4 + $0x1], 0  ;;  %s7326_s18 = smov 0   ;;  %s7328_s19 = smov 0  }
   0x5   :  { %s7330_s20 = smov 0   ;;  %s7332_s21 = smov 0  }
   0x6 LB: > { %s7347_s22 = sadd.s32 4294967295, %s7272_s21   ;;  %s6290_s23 = sadd.s32 4294967294, %s7272_s21   ;;  %s7272_s21 = sphi %s7332_s21, %s8413_s21   ;;  %s7268_s20 = sphi %s7330_s20, %s8412_s20   ;;  %s7264_s19 = sphi %s7328_s19, %s8411_s19   ;;  %s7260_s18 = sphi %s7326_s18, %s8410_s18  }
   0x7   : > { %p42_p0 = scmp.ne.s32.totalorder %s7264_s19, %s7260_s18  ;;  %p8391_p1 = scmp.eq.s32.totalorder %s7347_s22, 0 }
   0x8   : > { %p150_p2 = scmp.eq.s32.totalorder %s7347_s22, 1  ;;  %p156_p3 = scmp.eq.s32.totalorder %s6290_s23, 1 }
   0x9   : > { %p7356_p4 = por %p8391_p1, %p42_p0  ;;  %p6291_p5 = scmp.ge.s32.totalorder %s7272_s21, 1 }
   0xa   : > { %p7361_p6 = por %p156_p3, %p42_p0  ;;  %p163_p7 = scmp.lt.s32.totalorder %s7272_s21, 3 }
   0xb   : > { %s8396_s24 = scalar_select %p7356_p4, 1, 0 }
   0xc   : > { %s8397_s25 = scalar_select %p7361_p6, 1, 0 }
   0xd   : > { %p7366_p8 = pnand %p6291_p5, %p163_p7  ;;  %s7274_s27 = smov [#allocation5]  }
   0xe   : > { %s175_s28 = sshll.u32 %s7274_s27, 4  ;;  %s7275_s30 = smov [#allocation7]   ;;  %s176_s28 = int_to_ptr.vmem [resolvable:$true] %s175_s28 }
   0xf   : > { %s8398_s26 = scalar_select %p7366_p8, 1, 0 }
  0x10   : > { %p6923_p9 = pneg %p7366_p8  ;;  %s191_s6 = sshll.u32 %s7275_s30, 4  ;;  %s192_s6 = int_to_ptr.vmem [resolvable:$true] %s191_s6 }
  0x11   : > { %s7135_s7 = scalar_lea.vmem %s176_s28, 512  ;;  %p7143_p5 = scmp.lt.s32.totalorder %s176_s28, %s176_s28 }
  0x12   : > { %p7375_p11 = pnand %p6923_p9, %p8391_p1  ;;  %p7136_p13 = scmp.ne.s32.totalorder %s176_s28, %s7135_s7 }
  0x13   : > { %p7144_p7 = scmp.lt.s32.totalorder %s7135_s7, %s7135_s7 }
  0x14   : > { %p7126_p12 = pneg %p7375_p11 }
  0x15   : > { %p7145_p10 = por %p7144_p7, %p7143_p5 }
  0x16   : > { %p7138_p0 = pnand %p7136_p13, %p7126_p12 }
  0x18   : > { %p7139_p3 = pneg %p7138_p0 }
  0x1a   : > { %p7146_p9 = pnand %p7145_p10, %p7139_p3 }
  0x1c   : > { %7149 = shalt.err (!%p7146_p9)
}
  0x1d   : > { %s8392_s8 = smov 128   ;;  %s7277_s9 = smov 8  }
  0x1e   : > { %6926 = dma.hbm_to_vmem [thread:$0]  (!%p7375_p11), %s8386_s1, 512, %s176_s28, [#allocation6], %s8392_s8, %s8392_s8, %s7277_s9  }
  0x1f   : > { %s7161_s12 = scalar_lea.vmem %s192_s6, 512  ;;  %p7169_p10 = scmp.lt.s32.totalorder %s192_s6, %s192_s6 }
  0x20   : > { %p7162_p13 = scmp.ne.s32.totalorder %s192_s6, %s7161_s12  ;;  %p7170_p3 = scmp.lt.s32.totalorder %s7161_s12, %s7161_s12 }
  0x22   : > { %p7164_p0 = pnand %p7162_p13, %p7126_p12  ;;  %p7171_p7 = por %p7170_p3, %p7169_p10 }
  0x24   : > { %p7165_p5 = pneg %p7164_p0 }
  0x26   : > { %p7172_p9 = pnand %p7171_p7, %p7165_p5 }
  0x28   : > { %7175 = shalt.err (!%p7172_p9)
}
  0x29   : > { %6929 = dma.hbm_to_vmem [thread:$0]  (!%p7375_p11), %s8388_s3, 512, %s192_s6, [#allocation6], %s8392_s8, %s8392_s8, %s7277_s9  }
  0x2a   : > { %s7404_s15 = sadd.s32 1, %s7272_s21   ;;  %s29_s16 = sadd.s32 1, %s7268_s20 }
  0x2b   : > { %s26_s17 = ssub.s32 %s7272_s21, %s7404_s15  ;;  %p36_p12 = scmp.ne.s32.totalorder %s7268_s20, %s7264_s19 }
  0x2c   : > { %p27_p13 = scmp.eq.s32.totalorder %s26_s17, 0  ;;  %p37_p0 = scmp.eq.s32.totalorder %s7272_s21, 0 }
  0x2d   : > { %p7414_p5 = por %p150_p2, %p36_p12  ;;  %p6940_p10 = scmp.lt.s32.totalorder %s7272_s21, 2 }
  0x2e   : > { %s7420_s27 = scalar_select %p27_p13, %s7268_s20, %s29_s16  }
  0x2f   : > { %s8400_s23 = scalar_select %p7414_p5, 1, 0 }
  0x30   : > { %p38_p3 = por %p37_p0, %p36_p12  ;;  %s208_s28 = sand.u32 1, %s7268_s20  }
  0x31   : > { %s6295_s29 = sshll.u32 %s208_s28, 6  ;;  %s6414_s30 = sshll.u32 %s7272_s21, 10 }
  0x32   : > { %s7427_s10 = scalar_lea.hbm %s8385_s0, %s6414_s30  ;;  %s212_s11 = scalar_lea.vmem [#allocation2], %s6295_s29 }
  0x33   : > { %s219_s12 = sshll.u32 %s212_s11, 4  ;;  %p7431_p2 = pnand %p6940_p10, %p38_p3  ;;  %s7429_s12 = int_to_ptr.vmem [resolvable:$true] %s219_s12 }
  0x34   : > { %s7435_s14 = scalar_lea.sflag [#allocation3], %s208_s28  ;;  %s7176_s16 = scalar_lea.hbm %s7427_s10, 1024 }
  0x35   : > { %p7177_p11 = scmp.ne.s32.totalorder %s7427_s10, %s7176_s16  ;;  %p7178_p7 = pneg %p7431_p2 }
  0x36   : > { %s7181_s29 = scalar_lea.hbm %s8385_s0, 2048  ;;  %p7182_p13 = scmp.lt.s32.totalorder %s7427_s10, %s8385_s0 }
  0x37   : > { %p7179_p9 = pnand %p7178_p7, %p7177_p11  ;;  %p7183_p0 = scmp.lt.s32.totalorder %s7181_s29, %s7176_s16 }
  0x39   : > { %p7180_p12 = pneg %p7179_p9  ;;  %p7184_p10 = por %p7183_p0, %p7182_p13 }
  0x3b   : > { %p7185_p3 = pnand %p7184_p10, %p7180_p12 }
  0x3d   : > { %7188 = shalt.err (!%p7185_p3)
}
  0x3e   : > { %s7189_s28 = scalar_lea.vmem %s7429_s12, 1024  ;;  %s7278_s11 = smov [#allocation2]  }
  0x3f   : > { %p7190_p1 = scmp.ne.s32.totalorder %s7429_s12, %s7189_s28  ;;  %s7194_s8 = sshll.u32 %s7278_s11, 4  ;;  %s7195_s8 = int_to_ptr.vmem [resolvable:$false] %s7194_s8 }
  0x40   : > { %s7196_s17 = scalar_lea.vmem %s7195_s8, 2048  ;;  %p7197_p9 = scmp.lt.s32.totalorder %s7429_s12, %s7195_s8 }
  0x41   : > { %p7192_p6 = pnand %p7190_p1, %p7178_p7  ;;  %p7198_p5 = scmp.lt.s32.totalorder %s7196_s17, %s7189_s28 }
  0x43   : > { %p7193_p11 = pneg %p7192_p6  ;;  %p7199_p4 = por %p7198_p5, %p7197_p9 }
  0x45   : > { %p7200_p8 = pnand %p7199_p4, %p7193_p11 }
  0x47   : > { %7203 = shalt.err (!%p7200_p8)
}
  0x48   : > { %s8402_s16 = smov 128   ;;  %p8403_p1 = scmp.ne.s32.totalorder %s8398_s26, 0 }
  0x49   : > { %6933 = dma.hbm_to_vmem [thread:$0]  (!%p7431_p2), %s7427_s10, 1024, %s7429_s12, %s7435_s14, %s8402_s16, %s8402_s16, %s7277_s9  }
  0x4a   : > { %231 = sbr.rel (%p8403_p1) target bundleno = 3141 (0xc45), region = 40  ;;  %s7462_s30 = sand.u32 (!%p8403_p1), 1, %s7264_s19  }
  0x4b   : > { %s6299_s8 = sshll.u32 (!%p8403_p1), %s7462_s30, 6  ;;  %s234_s29 = scalar_lea.sflag (!%p8403_p1), [#allocation3], %s7462_s30 }
  0x4c   : > { %s7466_s6 = scalar_lea.vmem (!%p8403_p1), [#allocation2], %s6299_s8  ;;  %p8404_p4 = scmp.ne.s32.totalorder (!%p8403_p1), %s8396_s24, 0 }
  0x4f   : > { %7247 = dma.done.wait (%p8404_p4), %s234_s29, 1024  }
  0x50   : > { %7249 = vsyncadd (%p8404_p4), %s234_s29, 4294966272  ;;  %p8405_p6 = scmp.eq.s32.totalorder %s7347_s22, 0 }
  0x52   : > { %7251 = dma.done.wait (%p8405_p6), [#allocation6], 1024   ;;  %p8406_p8 = pmov %p8405_p6 }
  0x53   : > { %vm292_vm0 = vcmask 261120   ;;  %v284_v0 = vld [vmem:[#allocation5 + $0x18] sm:$0xff]  ;;  %v283_v1 = vld [vmem:[#allocation5 + $0x10] sm:$0xff]  ;;  %v273_v2 = vld [vmem:[%s7466_s6] sm:$0xff]  ;;  %v7279_v12 = vmov 0.0   ;;  %vm7280_vm1 = vmmov 0  }
  0x54   : > { %7253 = vsyncadd (%p8406_p8), [#allocation6], 4294966272  ;;  %6560 = vmatprep.subr.mxu0 %v284_v0  ;;  %v282_v3 = vld [vmem:[#allocation5 + $0x8] sm:$0xff]  ;;  %6568 = vmatprep.mubr.msk.f32.mxu0 %vm292_vm0, %v273_v2  ;;  %v281_v4 = vld [vmem:[#allocation5] sm:$0xff]  ;;  %s7281_s9 = smov 96   ;;  %vm425_vm2 = vcmask 64512  }
  0x55   : > { %6561 = vmatpush3.msra.mxu0 %v284_v0  ;;  %v274_v5 = vld [vmem:[%s7466_s6 + $0x8] sm:$0xff]  ;;  %v275_v6 = vld [vmem:[%s7466_s6 + $0x10] sm:$0xff]  ;;  %v276_v7 = vld [vmem:[%s7466_s6 + $0x18] sm:$0xff]  ;;  %6580 = vmatprep.subr.mxu1 %v7279_v12  ;;  %s7282_s10 = smov 64   ;;  %s7283_s12 = smov 88   ;;  %vm6056_vm3 = vcmask 130048  }
  0x56   : > { %6562 = vmatprep.subr.mxu0 %v283_v1  ;;  %v277_v8 = vld [vmem:[%s7466_s6 + $0x20] sm:$0xff]  ;;  %v278_v9 = vld [vmem:[%s7466_s6 + $0x28] sm:$0xff]  ;;  %v279_v10 = vld [vmem:[%s7466_s6 + $0x30] sm:$0xff]  ;;  %6582 = vmatprep.mubr.msk.f32.mxu1 %vm7280_vm1, %v7279_v12  ;;  %s7284_s13 = smov 120   ;;  %s7285_s14 = smov 56   ;;  %vm6065_vm4 = vcmask 195584  }
  0x57   : > { %6563 = vmatpush3.msra.mxu0 %v283_v1  ;;  %v280_v11 = vld [vmem:[%s7466_s6 + $0x38] sm:$0xff]  ;;  %v6303_v14 = vld [vmem:[%s8387_s2] ss:$0 sm:$0xff]  ;;  %s7286_s7 = smov 80   ;;  %s7287_s28 = smov 112   ;;  %vm6094_vm5 = vcmask 1041409  }
  0x58   : > { %6564 = vmatprep.subr.mxu0 %v282_v3  ;;  %s7288_s11 = smov 48   ;;  %s7289_s17 = smov 72   ;;  %vm6097_vm6 = vcmask 1042434   ;;  %vm6100_vm7 = vcmask 1043459   ;;  %vm6103_vm8 = vcmask 1044484   ;;  %vm6106_vm9 = vcmask 1045509  }
  0x59   : > { %6565 = vmatpush3.msra.mxu0 %v282_v3  ;;  %s7290_s16 = smov 104   ;;  %s7291_s8 = smov 40   ;;  %vm6109_vm10 = vcmask 1046534   ;;  %vm6112_vm11 = vcmask 1047559  }
  0x5a   : > { %6566 = vmatprep.subr.mxu0 %v281_v4  ;;  %s7292_s29 = smov 8   ;;  %s7293_s6 = smov 16  }
  0x5b   : > { %6567 = vmatpush3.msra.mxu0 %v281_v4  ;;  %s7294_s24 = smov 24   ;;  %s6302_s26 = sshll.u32 %s7462_s30, 3 }
  0x5c   : > { %6569 = vmatmul.mubr.msk.f32.vlgmr.msra.gmra.mxu0 %vm292_vm0, %v274_v5  ;;  %6605 = vmatprep.subr.mxu0 %v7279_v12  ;;  %p8407_p2 = scmp.ne.s32.totalorder %s8400_s23, 0 }
  0x5d   : > { %6571 = vmatprep.mubr.msk.f32.mxu0 %vm292_vm0, %v275_v6 }
  0x60   : > { %6572 = vmatmul.mubr.msk.f32.gmra.mxu0 %vm292_vm0, %v276_v7 }
  0x61   : > { %6574 = vmatprep.mubr.msk.f32.mxu0 %vm292_vm0, %v277_v8 }
  0x64   : > { %6575 = vmatmul.mubr.msk.f32.gmra.mxu0 %vm292_vm0, %v278_v9 }
  0x65   : > { %6577 = vmatprep.mubr.msk.f32.mxu0 %vm292_vm0, %v279_v10 }
  0x68   : > { %6578 = vmatmul.mubr.msk.f32.gmra.mxu0 %vm292_vm0, %v280_v11 }
  0x69   : > { %6607 = vmatprep.mubr.msk.f32.mxu0 %vm7280_vm1, %v7279_v12 }
 0x11c   : > { %v6570_v13 = vpop.f32.mrf.mxu0 }
 0x11d   : > { %v7504_v19 = vadd.f32 %v6570_v13, %v6303_v14 }
 0x11e   : > { %v383_v15 = vpop.f32.mrf.mxu0 }
 0x11f   : > { %v7501_v16 = vadd.f32 %v6303_v14, %v383_v15 }
 0x120   : > { %v6573_v17 = vpop.f32.mrf.mxu0 }
 0x121   : > { %423 = vrot.lane.b32.xlu0 %v7501_v16, %s7281_s9  ;;  %v7510_v23 = vadd.f32 %v6573_v17, %v6303_v14 }
 0x122   : > { %v393_v18 = vpop.f32.mrf.mxu0 }
 0x123   : > { %v7506_v20 = vadd.f32 %v6303_v14, %v393_v18 }
 0x124   : > { %v6576_v21 = vpop.f32.mrf.mxu0 }
 0x125   : > { %578 = vrot.lane.b32.xlu1 %v7506_v20, %s7281_s9  ;;  %501 = vrot.lane.b32.xlu0 %v7504_v19, %s7281_s9  ;;  %v7515_v26 = vadd.f32 %v6576_v21, %v6303_v14 }
 0x126   : > { %v403_v22 = vpop.f32.mrf.mxu0 }
 0x127   : > { %v7512_v24 = vadd.f32 %v6303_v14, %v403_v22 }
 0x128   : > { %v6579_v25 = vpop.f32.mrf.mxu0 }
 0x129   : > { %655 = vrot.lane.b32.xlu1 %v7510_v23, %s7281_s9  ;;  %732 = vrot.lane.b32.xlu0 %v7512_v24, %s7281_s9  ;;  %v7521_v29 = vadd.f32 %v6579_v25, %v6303_v14 }
 0x12a   : > { %v413_v27 = vpop.f32.mrf.mxu0 }
 0x12b   : > { %v7518_v28 = vadd.f32 %v6303_v14, %v413_v27 }
 0x12d   : > { %809 = vrot.lane.b32.xlu1 %v7515_v26, %s7281_s9  ;;  %886 = vrot.lane.b32.xlu0 %v7518_v28, %s7281_s9 }
 0x131   : > { %963 = vrot.lane.b32.xlu1 %v7521_v29, %s7281_s9 }
 0x193   : > { %v424_v30 = vpop.permute.xlu0 %423 }
 0x194   : > { %6581 = vmatpush3.xpose.msk.msra.mxu1 %vm425_vm2, %v424_v30 }
 0x195   : > { %6585 = vmatprep.subr.mxu1 %v7279_v12 }
 0x197   : > { %v579_v31 = vpop.permute.xlu1 %578  ;;  %6583 = vmatmul.mubr.msk.f32.vlgmr.msra.gmra.mxu1 %vm425_vm2, %v7501_v16  ;;  %v502_v32 = vpop.permute.xlu0 %501 }
 0x198   : > { %6586 = vmatpush3.xpose.msk.msra.mxu1 %vm425_vm2, %v502_v32  ;;  %6587 = vmatprep.mubr.msk.f32.mxu1 %vm7280_vm1, %v7279_v12 }
 0x199   : > { %6590 = vmatprep.subr.mxu1 %v7279_v12 }
 0x19b   : > { %v656_v33 = vpop.permute.xlu1 %655  ;;  %6588 = vmatmul.mubr.msk.f32.vlgmr.msra.gmra.mxu1 %vm425_vm2, %v7504_v19  ;;  %v733_v35 = vpop.permute.xlu0 %732 }
 0x19c   : > { %6591 = vmatpush3.xpose.msk.msra.mxu1 %vm425_vm2, %v579_v31  ;;  %6592 = vmatprep.mubr.msk.f32.mxu1 %vm7280_vm1, %v7279_v12 }
 0x19d   : > { %6595 = vmatprep.subr.mxu1 %v7279_v12 }
 0x19f   : > { %v810_v34 = vpop.permute.xlu1 %809  ;;  %6593 = vmatmul.mubr.msk.f32.vlgmr.msra.gmra.mxu1 %vm425_vm2, %v7506_v20  ;;  %v887_v37 = vpop.permute.xlu0 %886 }
 0x1a0   : > { %6596 = vmatpush3.xpose.msk.msra.mxu1 %vm425_vm2, %v656_v33  ;;  %6606 = vmatpush3.xpose.msk.msra.mxu0 %vm425_vm2, %v810_v34 }
 0x1a1   : > { %6597 = vmatprep.mubr.msk.f32.mxu1 %vm7280_vm1, %v7279_v12  ;;  %6615 = vmatprep.subr.mxu0 %v7279_v12 }
 0x1a2   : > { %6600 = vmatprep.subr.mxu1 %v7279_v12 }
 0x1a3   : > { %6608 = vmatmul.mubr.msk.f32.vlgmr.msra.gmra.mxu0 %vm425_vm2, %v7515_v26  ;;  %v964_v36 = vpop.permute.xlu1 %963  ;;  %6598 = vmatmul.mubr.msk.f32.vlgmr.msra.gmra.mxu1 %vm425_vm2, %v7510_v23 }
 0x1a4   : > { %6601 = vmatpush3.xpose.msk.msra.mxu1 %vm425_vm2, %v733_v35  ;;  %6616 = vmatpush3.xpose.msk.msra.mxu0 %vm425_vm2, %v964_v36 }
 0x1a5   : > { %6602 = vmatprep.mubr.msk.f32.mxu1 %vm7280_vm1, %v7279_v12  ;;  %6617 = vmatprep.mubr.msk.f32.mxu0 %vm7280_vm1, %v7279_v12 }
 0x1a6   : > { %6610 = vmatprep.subr.mxu1 %v7279_v12  ;;  %6625 = vmatprep.subr.mxu0 %v7279_v12 }
 0x1a7   : > { %6603 = vmatmul.mubr.msk.f32.vlgmr.msra.gmra.mxu1 %vm425_vm2, %v7512_v24  ;;  %6618 = vmatmul.mubr.msk.f32.vlgmr.msra.gmra.mxu0 %vm425_vm2, %v7521_v29 }
 0x1a8   : > { %6611 = vmatpush3.xpose.msk.msra.mxu1 %vm425_vm2, %v887_v37  ;;  %6612 = vmatprep.mubr.msk.f32.mxu1 %vm7280_vm1, %v7279_v12 }
 0x1a9   : > { %6620 = vmatprep.subr.mxu1 %v7279_v12  ;;  %6627 = vmatprep.mubr.msk.f32.mxu0 %vm7280_vm1, %v7279_v12 }
 0x1ab   : > { %6613 = vmatmul.mubr.msk.f32.vlgmr.msra.gmra.mxu1 %vm425_vm2, %v7518_v28 }
 0x1ac   : > { %6622 = vmatprep.mubr.msk.f32.mxu1 %vm7280_vm1, %v7279_v12 }
 0x257   : > { %v496_v38 = vpop.f32.mrf.mxu1 }
 0x258   : > { %v1039_v39 = vsel %vm425_vm2, %v496_v38, -inf }
 0x259   : > { %1040 = vmax.xlane.f32.xlu0 %v1039_v39  ;;  %v6584_v40 = vpop.f32.mrf.mxu1 }
 0x25b   : > { %v573_v41 = vpop.f32.mrf.mxu1 }
 0x25c   : > { %v1042_v42 = vsel %vm425_vm2, %v573_v41, -inf }
 0x25d   : > { %1043 = vmax.xlane.f32.xlu1 %v1042_v42  ;;  %v6589_v43 = vpop.f32.mrf.mxu1 }
 0x25f   : > { %v650_v44 = vpop.f32.mrf.mxu1 }
 0x260   : > { %v1045_v45 = vsel %vm425_vm2, %v650_v44, -inf }
 0x261   : > { %1046 = vmax.xlane.f32.xlu0 %v1045_v45  ;;  %v6594_v46 = vpop.f32.mrf.mxu1 }
 0x263   : > { %v727_v47 = vpop.f32.mrf.mxu1  ;;  %v881_v48 = vpop.f32.mrf.mxu0 }
 0x264   : > { %v1048_v49 = vsel %vm425_vm2, %v727_v47, -inf  ;;  %v1054_v54 = vsel %vm425_vm2, %v881_v48, -inf }
 0x265   : > { %v6609_v50 = vpop.f32.mrf.mxu0  ;;  %1049 = vmax.xlane.f32.xlu0 %v1048_v49  ;;  %v6599_v51 = vpop.f32.mrf.mxu1 }
 0x267   : > { %v7577_v52 = vpop.f32.mrf.mxu1  ;;  %v1035_v53 = vpop.f32.mrf.mxu0 }
 0x268   : > { %v1060_v58 = vsel %vm425_vm2, %v1035_v53, -inf  ;;  %v1051_v60 = vsel %vm425_vm2, %v7577_v52, -inf }
 0x269   : > { %v6619_v55 = vpop.f32.mrf.mxu0  ;;  %1055 = vmax.xlane.f32.xlu0 %v1054_v54  ;;  %v6604_v56 = vpop.f32.mrf.mxu1 }
 0x26b   : > { %v7580_v57 = vpop.f32.mrf.mxu1 }
 0x26c   : > { %v1057_v61 = vsel %vm425_vm2, %v7580_v57, -inf }
 0x26d   : > { %1061 = vmax.xlane.f32.xlu0 %v1060_v58  ;;  %v6614_v59 = vpop.f32.mrf.mxu1 }
 0x26e   : > { %1192 = vrot.lane.b32.xlu1 %v7501_v16, %s7282_s10 }
 0x272   : > { %1344 = vrot.lane.b32.xlu1 %v7506_v20, %s7282_s10 }
 0x283   : > { %1268 = vrot.lane.b32.xlu0 %v7504_v19, %s7282_s10 }
 0x296   : > { %1052 = vmax.xlane.f32.xlu1 %v1051_v60 }
 0x29a   : > { %1058 = vmax.xlane.f32.xlu1 %v1057_v61 }
 0x2ab   : > { %1420 = vrot.lane.b32.xlu1 %v7510_v23, %s7282_s10 }
 0x2e2   : > { %v1041_v62 = vpop.xlane.xlu0 %1040 }
 0x2e3   : > { %v1063_v63 = vsub.f32 %v496_v38, %v1041_v62 }
 0x2e5   : > { %v1071_v0 = vmul.f32 1.442695, %v1063_v63 }
 0x2e6   : > { %v1044_v1 = vpop.xlane.xlu1 %1043 }
 0x2e7   : > { %6996 = vpow2.f32 %v1071_v0  ;;  %v1064_v2 = vsub.f32 %v573_v41, %v1044_v1 }
 0x2e9   : > { %v1073_v3 = vmul.f32 1.442695, %v1064_v2 }
 0x2ea   : > { %v1193_v4 = vpop.permute.xlu1 %1192  ;;  %v1047_v5 = vpop.xlane.xlu0 %1046 }
 0x2eb   : > { %6998 = vpow2.f32 %v1073_v3  ;;  %v1065_v6 = vsub.f32 %v650_v44, %v1047_v5  ;;  %6621 = vmatpush3.msra.mxu1 %v1193_v4 }
 0x2ec   : > { %6630 = vmatprep.subr.mxu1 %v7279_v12 }
 0x2ed   : > { %v1075_v7 = vmul.f32 1.442695, %v1065_v6 }
 0x2ee   : > { %v1050_v8 = vpop.xlane.xlu0 %1049  ;;  %v7627_v39 = vpop.permute.xlu1 %1344 }
 0x2ef   : > { %7000 = vpow2.f32 %v1075_v7  ;;  %v1066_v13 = vsub.f32 %v727_v47, %v1050_v8 }
 0x2f1   : > { %v1077_v22 = vmul.f32 1.442695, %v1066_v13 }
 0x2f2   : > { %v1056_v9 = vpop.xlane.xlu0 %1055 }
 0x2f3   : > { %v1068_v10 = vsub.f32 %v881_v48, %v1056_v9 }
 0x2f4   : > { %v7596_v11 = vpop.eup %6996 }
 0x2f5   : > { %v1081_v14 = vmul.f32 1.442695, %v1068_v10  ;;  %v1087_v15 = vsel %vm425_vm2, %v7596_v11, 0.0 }
 0x2f6   : > { %1088 = vadd.xlane.f32.xlu1 %v1087_v15  ;;  %v1062_v17 = vpop.xlane.xlu0 %1061 }
 0x2f7   : > { %7002 = vpow2.f32 %v1081_v14  ;;  %v1070_v18 = vsub.f32 %v1035_v53, %v1062_v17 }
 0x2f8   : > { %v7600_v21 = vpop.eup %6998 }
 0x2f9   : > { %v1085_v25 = vmul.f32 1.442695, %v1070_v18  ;;  %v1090_v27 = vsel %vm425_vm2, %v7600_v21, 0.0 }
 0x2fa   : > { %1091 = vadd.xlane.f32.xlu0 %v1090_v27  ;;  %v1269_v30 = vpop.permute.xlu0 %1268 }
 0x2fb   : > { %7004 = vpow2.f32 %v1085_v25  ;;  %6626 = vmatpush3.msra.mxu0 %v1269_v30 }
 0x2fc   : > { %v7604_v31 = vpop.eup %7000  ;;  %6635 = vmatprep.subr.mxu0 %v7279_v12  ;;  %7006 = vpow2.f32 %v1077_v22 }
 0x2fd   : > { %v1093_v32 = vsel %vm425_vm2, %v7604_v31, 0.0 }
 0x2fe   : > { %1094 = vadd.xlane.f32.xlu1 %v1093_v32 }
 0x304   : > { %v7609_v33 = vpop.eup %7002 }
 0x305   : > { %v1102_v34 = vsel %vm425_vm2, %v7609_v33, 0.0 }
 0x306   : > { %1103 = vadd.xlane.f32.xlu0 %v1102_v34 }
 0x308   : > { %v7613_v35 = vpop.eup %7004 }
 0x309   : > { %v1108_v36 = vsel %vm425_vm2, %v7613_v35, 0.0  ;;  %v7617_v37 = vpop.eup %7006 }
 0x30a   : > { %1109 = vadd.xlane.f32.xlu0 %v1108_v36  ;;  %v1096_v38 = vsel %vm425_vm2, %v7617_v37, 0.0 }
 0x30e   : > { %1097 = vadd.xlane.f32.xlu0 %v1096_v38 }
 0x30f   : > { %1572 = vrot.lane.b32.xlu1 %v7515_v26, %s7282_s10 }
 0x313   : > { %1724 = vrot.lane.b32.xlu1 %v7521_v29, %s7282_s10 }
 0x317   : > { %1880 = vrot.lane.b32.xlu1 %v7504_v19, %s7283_s12 }
 0x31f   : > { %v1053_v40 = vpop.xlane.xlu1 %1052 }
 0x320   : > { %v1067_v41 = vsub.f32 %v7577_v52, %v1053_v40 }
 0x322   : > { %v1079_v43 = vmul.f32 1.442695, %v1067_v41 }
 0x323   : > { %v1059_v42 = vpop.xlane.xlu1 %1058 }
 0x324   : > { %1496 = vrot.lane.b32.xlu0 %v7512_v24, %s7282_s10  ;;  %v1069_v44 = vsub.f32 %v7580_v57, %v1059_v42  ;;  %7008 = vpow2.f32 %v1079_v43 }
 0x326   : > { %v1083_v45 = vmul.f32 1.442695, %v1069_v44 }
 0x327   : > { %v1421_v50 = vpop.permute.xlu1 %1420 }
 0x328   : > { %1648 = vrot.lane.b32.xlu0 %v7518_v28, %s7282_s10  ;;  %7010 = vpow2.f32 %v1083_v45 }
 0x32c   : > { %1802 = vrot.lane.b32.xlu0 %v7501_v16, %s7283_s12 }
 0x330   : > { %1800 = vrot.lane.b32.xlu0 %v7501_v16, %s7284_s13 }
 0x331   : > { %v7640_v46 = vpop.eup %7008 }
 0x332   : > { %v1099_v47 = vsel %vm425_vm2, %v7640_v46, 0.0 }
 0x334   : > { %1958 = vrot.lane.b32.xlu0 %v7506_v20, %s7283_s12 }
 0x335   : > { %v7645_v48 = vpop.eup %7010 }
 0x336   : > { %v1105_v49 = vsel %vm425_vm2, %v7645_v48, 0.0 }
 0x338   : > { %1956 = vrot.lane.b32.xlu0 %v7506_v20, %s7284_s13 }
 0x33b   : > { %1100 = vadd.xlane.f32.xlu1 %v1099_v47 }
 0x33c   : > { %2114 = vrot.lane.b32.xlu0 %v7512_v24, %s7283_s12 }
 0x33f   : > { %1106 = vadd.xlane.f32.xlu1 %v1105_v49 }
 0x340   : > { %2112 = vrot.lane.b32.xlu0 %v7512_v24, %s7284_s13 }
 0x344   : > { %2270 = vrot.lane.b32.xlu0 %v7518_v28, %s7283_s12 }
 0x348   : > { %2268 = vrot.lane.b32.xlu0 %v7518_v28, %s7284_s13 }
 0x350   : > { %1878 = vrot.lane.b32.xlu1 %v7504_v19, %s7284_s13 }
 0x354   : > { %2036 = vrot.lane.b32.xlu1 %v7510_v23, %s7283_s12 }
 0x358   : > { %2034 = vrot.lane.b32.xlu1 %v7510_v23, %s7284_s13 }
 0x35c   : > { %2192 = vrot.lane.b32.xlu1 %v7515_v26, %s7283_s12 }
 0x360   : > { %2190 = vrot.lane.b32.xlu1 %v7515_v26, %s7284_s13 }
 0x364   : > { %2348 = vrot.lane.b32.xlu1 %v7521_v29, %s7283_s12  ;;  %s6411_s12 = sshll.u32 %s7347_s22, 7  ;;  %s7295_s22 = smov [#allocation8]  }
 0x368   : > { %2346 = vrot.lane.b32.xlu1 %v7521_v29, %s7284_s13  ;;  %s271_s13 = scalar_lea.vmem [#allocation8], %s6302_s26 }
 0x37f   : > { %v1089_v51 = vpop.xlane.xlu1 %1088 }
 0x380   : > { %7012 = vrcp.f32 %v1089_v51 }
 0x383   : > { %v1092_v52 = vpop.xlane.xlu0 %1091 }
 0x384   : > { %7014 = vrcp.f32 %v1092_v52 }
 0x387   : > { %v1095_v53 = vpop.xlane.xlu1 %1094 }
 0x388   : > { %7016 = vrcp.f32 %v1095_v53 }
 0x38d   : > { %v7013_v54 = vpop.eup %7012 }
 0x38e   : > { %v1112_v55 = vmul.f32 %v7013_v54, %v7596_v11 }
 0x38f   : > { %v1104_v56 = vpop.xlane.xlu0 %1103 }
 0x390   : > { %7018 = vrcp.f32 %v1104_v56  ;;  %v1127_v57 = vsel %vm425_vm2, %v1112_v55, 0.0 }
 0x391   : > { %v7015_v58 = vpop.eup %7014  ;;  %v1128_v59 = vrot.slane %v1127_v57, 4 }
 0x392   : > { %v1114_v60 = vmul.f32 %v7015_v58, %v7600_v21  ;;  %v1573_v58 = vpop.permute.xlu1 %1572 }
 0x393   : > { %v1110_v61 = vpop.xlane.xlu0 %1109  ;;  %v1129_v62 = vadd.f32 %v1128_v59, %v1127_v57 }
 0x394   : > { %7020 = vrcp.f32 %v1110_v61  ;;  %v1134_v63 = vsel %vm425_vm2, %v1114_v60, 0.0 }
 0x395   : > { %v7017_v0 = vpop.eup %7016  ;;  %v1130_v1 = vrot.slane %v1129_v62, 2  ;;  %v1135_v2 = vrot.slane %v1134_v63, 4 }
 0x396   : > { %v1116_v3 = vmul.f32 %v7017_v0, %v7604_v31 }
 0x397   : > { %v1098_v4 = vpop.xlane.xlu0 %1097  ;;  %v1131_v5 = vadd.f32 %v1130_v1, %v1129_v62  ;;  %v1136_v6 = vadd.f32 %v1135_v2, %v1134_v63  ;;  %v1725_v63 = vpop.permute.xlu1 %1724 }
 0x398   : > { %7022 = vrcp.f32 %v1098_v4  ;;  %v1141_v7 = vsel %vm425_vm2, %v1116_v3, 0.0 }
 0x399   : > { %v1132_v8 = vrot.slane %v1131_v5, 1  ;;  %v1137_v9 = vrot.slane %v1136_v6, 2  ;;  %v1142_v10 = vrot.slane %v1141_v7, 4 }
 0x39b   : > { %v1133_v11 = vadd.f32 %v1132_v8, %v1131_v5  ;;  %v1138_v13 = vadd.f32 %v1137_v9, %v1136_v6  ;;  %v1143_v14 = vadd.f32 %v1142_v10, %v1141_v7  ;;  %v1497_v45 = vpop.permute.xlu0 %1496  ;;  %v1881_v3 = vpop.permute.xlu1 %1880 }
 0x39d   : > { %v7019_v15 = vpop.eup %7018  ;;  %v1184_v17 = vmul.f32 0.125, %v1133_v11  ;;  %v1139_v18 = vrot.slane %v1138_v13, 1  ;;  %v1144_v21 = vrot.slane %v1143_v14, 2 }
 0x39e   : > { %v1122_v22 = vmul.f32 %v7019_v15, %v7609_v33 }
 0x39f   : > { %6623 = vmatmul.mubr.msk.f32.vlgmr.msra.gmra.mxu1 %vm425_vm2, %v1184_v17  ;;  %v1140_v25 = vadd.f32 %v1139_v18, %v1138_v13  ;;  %v1145_v27 = vadd.f32 %v1144_v21, %v1143_v14  ;;  %v1649_v5 = vpop.permute.xlu0 %1648 }
 0x3a0   : > { %6631 = vmatpush3.msra.mxu1 %v7627_v39  ;;  %6632 = vmatprep.mubr.msk.f32.mxu1 %vm7280_vm1, %v7279_v12  ;;  %v1162_v30 = vsel %vm425_vm2, %v1122_v22, 0.0 }
 0x3a1   : > { %v7021_v31 = vpop.eup %7020  ;;  %v1185_v32 = vmul.f32 0.125, %v1140_v25  ;;  %6640 = vmatprep.subr.mxu1 %v7279_v12  ;;  %v1146_v34 = vrot.slane %v1145_v27, 1  ;;  %v1163_v36 = vrot.slane %v1162_v30, 4 }
 0x3a2   : > { %v1126_v38 = vmul.f32 %v7021_v31, %v7613_v35 }
 0x3a3   : > { %6628 = vmatmul.mubr.msk.f32.vlgmr.msra.gmra.mxu0 %vm425_vm2, %v1185_v32  ;;  %v1147_v33 = vadd.f32 %v1146_v34, %v1145_v27  ;;  %v1164_v42 = vadd.f32 %v1163_v36, %v1162_v30  ;;  %v1803_v8 = vpop.permute.xlu0 %1802 }
 0x3a4   : > { %6636 = vmatpush3.msra.mxu0 %v1421_v50  ;;  %6637 = vmatprep.mubr.msk.f32.mxu0 %vm7280_vm1, %v7279_v12  ;;  %v1176_v39 = vsel %vm425_vm2, %v1126_v38, 0.0 }
 0x3a5   : > { %v7023_v40 = vpop.eup %7022  ;;  %v1186_v41 = vmul.f32 0.125, %v1147_v33  ;;  %6645 = vmatprep.subr.mxu0 %v7279_v12  ;;  %v1177_v43 = vrot.slane %v1176_v39, 4  ;;  %v1165_v49 = vrot.slane %v1164_v42, 2 }
 0x3a6   : > { %v1118_v44 = vmul.f32 %v7023_v40, %v7617_v37 }
 0x3a7   : > { %6633 = vmatmul.mubr.msk.f32.vlgmr.msra.gmra.mxu1 %vm425_vm2, %v1186_v41  ;;  %v1178_v50 = vadd.f32 %v1177_v43, %v1176_v39  ;;  %v1166_v53 = vadd.f32 %v1165_v49, %v1164_v42  ;;  %v1801_v11 = vpop.permute.xlu0 %1800 }
 0x3a8   : > { %6641 = vmatpush3.msra.mxu1 %v1497_v45  ;;  %v1148_v35 = vsel %vm425_vm2, %v1118_v44, 0.0  ;;  %6642 = vmatprep.mubr.msk.f32.mxu1 %vm7280_vm1, %v7279_v12 }
 0x3a9   : > { %v1149_v47 = vrot.slane %v1148_v35, 4  ;;  %6650 = vmatprep.subr.mxu1 %v7279_v12  ;;  %v1179_v54 = vrot.slane %v1178_v50, 2  ;;  %v1167_v56 = vrot.slane %v1166_v53, 1 }
 0x3ab   : > { %v1150_v51 = vadd.f32 %v1149_v47, %v1148_v35  ;;  %v1180_v57 = vadd.f32 %v1179_v54, %v1178_v50  ;;  %v1168_v61 = vadd.f32 %v1167_v56, %v1166_v53  ;;  %v1959_v27 = vpop.permute.xlu0 %1958 }
 0x3ad   : > { %v1151_v52 = vrot.slane %v1150_v51, 2  ;;  %v1181_v62 = vrot.slane %v1180_v57, 1  ;;  %v1189_v0 = vmul.f32 0.125, %v1168_v61 }
 0x3af   : > { %v1152_v55 = vadd.f32 %v1151_v52, %v1150_v51  ;;  %v1182_v1 = vadd.f32 %v1181_v62, %v1180_v57  ;;  %v1957_v33 = vpop.permute.xlu0 %1956 }
 0x3b1   : > { %v1153_v37 = vrot.slane %v1152_v55, 1  ;;  %v1191_v2 = vmul.f32 0.125, %v1182_v1 }
 0x3b3   : > { %v1154_v59 = vadd.f32 %v1153_v37, %v1152_v55  ;;  %v2115_v35 = vpop.permute.xlu0 %2114 }
 0x3b5   : > { %v1187_v60 = vmul.f32 0.125, %v1154_v59 }
 0x3b7   : > { %6638 = vmatmul.mubr.msk.f32.vlgmr.msra.gmra.mxu0 %vm425_vm2, %v1187_v60  ;;  %v2113_v49 = vpop.permute.xlu0 %2112 }
 0x3b8   : > { %6646 = vmatpush3.msra.mxu0 %v1573_v58  ;;  %6647 = vmatprep.mubr.msk.f32.mxu0 %vm7280_vm1, %v7279_v12 }
 0x3b9   : > { %6655 = vmatprep.subr.mxu0 %v7279_v12 }
 0x3bb   : > { %6648 = vmatmul.mubr.msk.f32.vlgmr.msra.gmra.mxu0 %vm425_vm2, %v1189_v0  ;;  %v2271_v50 = vpop.permute.xlu0 %2270 }
 0x3bc   : > { %6656 = vmatpush3.msra.mxu0 %v1725_v63  ;;  %6657 = vmatprep.mubr.msk.f32.mxu0 %vm7280_vm1, %v7279_v12 }
 0x3bd   : > { %6665 = vmatprep.subr.mxu0 %v7279_v12 }
 0x3bf   : > { %6658 = vmatmul.mubr.msk.f32.vlgmr.msra.gmra.mxu0 %vm425_vm2, %v1191_v2  ;;  %v2269_v51 = vpop.permute.xlu0 %2268 }
 0x3c0   : > { %6666 = vmatpush3.xpose.msk.msra.mxu0 %vm425_vm2, %v1881_v3  ;;  %6667 = vmatprep.mubr.msk.f32.mxu0 %vm7280_vm1, %v7279_v12 }
 0x3c1   : > { %6675 = vmatprep.subr.mxu0 %v7279_v12 }
 0x3c4   : > { %v1101_v4 = vpop.xlane.xlu1 %1100 }
 0x3c5   : > { %7024 = vrcp.f32 %v1101_v4 }
 0x3c8   : > { %v1107_v6 = vpop.xlane.xlu1 %1106 }
 0x3c9   : > { %7026 = vrcp.f32 %v1107_v6 }
 0x3cc   : > { %v1879_v7 = vpop.permute.xlu1 %1878 }
 0x3cd   : > { %6668 = vmatmul.mubr.msk.f32.vlgmr.msra.gmra.mxu0 %vm425_vm2, %v1879_v7 }
 0x3ce   : > { %6677 = vmatprep.mubr.msk.f32.mxu0 %vm7280_vm1, %v7279_v12 }
 0x3d0   : > { %v2037_v9 = vpop.permute.xlu1 %2036 }
 0x3d1   : > { %6676 = vmatpush3.xpose.msk.msra.mxu0 %vm425_vm2, %v2037_v9 }
 0x3d2   : > { %v7025_v10 = vpop.eup %7024  ;;  %6685 = vmatprep.subr.mxu0 %v7279_v12 }
 0x3d3   : > { %v1120_v13 = vmul.f32 %v7025_v10, %v7640_v46 }
 0x3d4   : > { %v2035_v14 = vpop.permute.xlu1 %2034 }
 0x3d5   : > { %6678 = vmatmul.mubr.msk.f32.vlgmr.msra.gmra.mxu0 %vm425_vm2, %v2035_v14  ;;  %v1155_v15 = vsel %vm425_vm2, %v1120_v13, 0.0 }
 0x3d6   : > { %v7027_v17 = vpop.eup %7026  ;;  %6687 = vmatprep.mubr.msk.f32.mxu0 %vm7280_vm1, %v7279_v12  ;;  %v1156_v18 = vrot.slane %v1155_v15, 4 }
 0x3d7   : > { %v1124_v21 = vmul.f32 %v7027_v17, %v7645_v48 }
 0x3d8   : > { %v2193_v22 = vpop.permute.xlu1 %2192  ;;  %v1157_v25 = vadd.f32 %v1156_v18, %v1155_v15 }
 0x3d9   : > { %6686 = vmatpush3.xpose.msk.msra.mxu0 %vm425_vm2, %v2193_v22  ;;  %v1169_v30 = vsel %vm425_vm2, %v1124_v21, 0.0 }
 0x3da   : > { %6695 = vmatprep.subr.mxu0 %v7279_v12  ;;  %v1158_v46 = vrot.slane %v1157_v25, 2  ;;  %v1170_v31 = vrot.slane %v1169_v30, 4 }
 0x3dc   : > { %v2191_v32 = vpop.permute.xlu1 %2190  ;;  %v1159_v34 = vadd.f32 %v1158_v46, %v1157_v25  ;;  %v1171_v36 = vadd.f32 %v1170_v31, %v1169_v30 }
 0x3dd   : > { %6688 = vmatmul.mubr.msk.f32.vlgmr.msra.gmra.mxu0 %vm425_vm2, %v2191_v32 }
 0x3de   : > { %v1160_v38 = vrot.slane %v1159_v34, 1  ;;  %6697 = vmatprep.mubr.msk.f32.mxu0 %vm7280_vm1, %v7279_v12  ;;  %v1172_v48 = vrot.slane %v1171_v36, 2 }
 0x3e0   : > { %v2349_v39 = vpop.permute.xlu1 %2348  ;;  %v1161_v40 = vadd.f32 %v1160_v38, %v1159_v34  ;;  %v1173_v41 = vadd.f32 %v1172_v48, %v1171_v36 }
 0x3e1   : > { %6696 = vmatpush3.xpose.msk.msra.mxu0 %vm425_vm2, %v2349_v39 }
 0x3e2   : > { %v1188_v42 = vmul.f32 0.125, %v1161_v40  ;;  %v1174_v43 = vrot.slane %v1173_v41, 1  ;;  %6705 = vmatprep.subr.mxu0 %v7279_v12 }
 0x3e4   : > { %v2347_v44 = vpop.permute.xlu1 %2346  ;;  %6643 = vmatmul.mubr.msk.f32.vlgmr.msra.gmra.mxu1 %vm425_vm2, %v1188_v42  ;;  %v1175_v45 = vadd.f32 %v1174_v43, %v1173_v41 }
 0x3e5   : > { %6651 = vmatpush3.msra.mxu1 %v1649_v5  ;;  %6698 = vmatmul.mubr.msk.f32.vlgmr.msra.gmra.mxu0 %vm425_vm2, %v2347_v44 }
 0x3e6   : > { %6652 = vmatprep.mubr.msk.f32.mxu1 %vm7280_vm1, %v7279_v12  ;;  %6660 = vmatprep.subr.mxu1 %v7279_v12  ;;  %v1190_v47 = vmul.f32 0.125, %v1175_v45 }
 0x3e7   : > { %6707 = vmatprep.mubr.msk.f32.mxu0 %vm7280_vm1, %v7279_v12 }
 0x3e8   : > { %6653 = vmatmul.mubr.msk.f32.vlgmr.msra.gmra.mxu1 %vm425_vm2, %v1190_v47 }
 0x3e9   : > { %6661 = vmatpush3.xpose.msk.msra.mxu1 %vm425_vm2, %v1803_v8  ;;  %6662 = vmatprep.mubr.msk.f32.mxu1 %vm7280_vm1, %v7279_v12 }
 0x3ea   : > { %6670 = vmatprep.subr.mxu1 %v7279_v12 }
 0x3ec   : > { %6663 = vmatmul.mubr.msk.f32.vlgmr.msra.gmra.mxu1 %vm425_vm2, %v1801_v11 }
 0x3ed   : > { %6671 = vmatpush3.xpose.msk.msra.mxu1 %vm425_vm2, %v1959_v27  ;;  %6672 = vmatprep.mubr.msk.f32.mxu1 %vm7280_vm1, %v7279_v12 }
 0x3ee   : > { %6680 = vmatprep.subr.mxu1 %v7279_v12 }
 0x3f0   : > { %6673 = vmatmul.mubr.msk.f32.vlgmr.msra.gmra.mxu1 %vm425_vm2, %v1957_v33 }
 0x3f1   : > { %6681 = vmatpush3.xpose.msk.msra.mxu1 %vm425_vm2, %v2115_v35  ;;  %6682 = vmatprep.mubr.msk.f32.mxu1 %vm7280_vm1, %v7279_v12 }
 0x3f2   : > { %6690 = vmatprep.subr.mxu1 %v7279_v12 }
 0x3f4   : > { %6683 = vmatmul.mubr.msk.f32.vlgmr.msra.gmra.mxu1 %vm425_vm2, %v2113_v49 }
 0x3f5   : > { %6691 = vmatpush3.xpose.msk.msra.mxu1 %vm425_vm2, %v2271_v50  ;;  %6692 = vmatprep.mubr.msk.f32.mxu1 %vm7280_vm1, %v7279_v12 }
 0x3f6   : > { %6700 = vmatprep.subr.mxu1 %v7279_v12 }
 0x3f8   : > { %6693 = vmatmul.mubr.msk.f32.vlgmr.msra.gmra.mxu1 %vm425_vm2, %v2269_v51 }
 0x3f9   : > { %6702 = vmatprep.mubr.msk.f32.mxu1 %vm7280_vm1, %v7279_v12 }
 0x45f   : > { %v7752_v52 = vpop.f32.mrf.mxu1 }
 0x461   : > { %v6624_v53 = vpop.f32.mrf.mxu1 }
 0x463   : > { %v7754_v54 = vpop.f32.mrf.mxu0 }
 0x465   : > { %v6629_v55 = vpop.f32.mrf.mxu0 }
 0x467   : > { %v7756_v37 = vpop.f32.mrf.mxu1 }
 0x469   : > { %v6634_v56 = vpop.f32.mrf.mxu1 }
 0x477   : > { %v7758_v57 = vpop.f32.mrf.mxu0 }
 0x479   : > { %v6639_v58 = vpop.f32.mrf.mxu0 }
 0x47b   : > { %v7760_v59 = vpop.f32.mrf.mxu0 }
 0x47d   : > { %v6649_v60 = vpop.f32.mrf.mxu0 }
 0x47f   : > { %v7762_v61 = vpop.f32.mrf.mxu0 }
 0x481   : > { %v6659_v62 = vpop.f32.mrf.mxu0 }
 0x48d   : > { %v1952_v63 = vpop.f32.mrf.mxu0 }
 0x48e   : > { %v2427_v0 = vsel %vm425_vm2, %v1952_v63, -inf }
 0x48f   : > { %2428 = vmax.xlane.f32.xlu1 %v2427_v0  ;;  %v6669_v1 = vpop.f32.mrf.mxu0 }
 0x495   : > { %v2108_v2 = vpop.f32.mrf.mxu0 }
 0x496   : > { %v2433_v25 = vsel %vm425_vm2, %v2108_v2, -inf }
 0x497   : > { %v6679_v3 = vpop.f32.mrf.mxu0 }
 0x49d   : > { %v7765_v4 = vpop.f32.mrf.mxu0 }
 0x49e   : > { %v2439_v31 = vsel %vm425_vm2, %v7765_v4, -inf }
 0x49f   : > { %v6689_v5 = vpop.f32.mrf.mxu0 }
 0x4a4   : > { %v7767_v6 = vpop.f32.mrf.mxu1 }
 0x4a5   : > { %v7769_v7 = vpop.f32.mrf.mxu0 }
 0x4a6   : > { %v6644_v8 = vpop.f32.mrf.mxu1  ;;  %v2445_v36 = vsel %vm425_vm2, %v7769_v7, -inf }
 0x4a7   : > { %v6699_v9 = vpop.f32.mrf.mxu0 }
 0x4a8   : > { %v7771_v10 = vpop.f32.mrf.mxu1 }
 0x4aa   : > { %v6654_v11 = vpop.f32.mrf.mxu1 }
 0x4ac   : > { %v1874_v13 = vpop.f32.mrf.mxu1 }
 0x4ad   : > { %v2424_v14 = vsel %vm425_vm2, %v1874_v13, -inf }
 0x4ae   : > { %2425 = vmax.xlane.f32.xlu0 %v2424_v14  ;;  %v6664_v15 = vpop.f32.mrf.mxu1 }
 0x4b0   : > { %v2030_v17 = vpop.f32.mrf.mxu1 }
 0x4b1   : > { %v2430_v18 = vsel %vm425_vm2, %v2030_v17, -inf }
 0x4b2   : > { %2431 = vmax.xlane.f32.xlu0 %v2430_v18  ;;  %v6674_v21 = vpop.f32.mrf.mxu1 }
 0x4b4   : > { %v2186_v22 = vpop.f32.mrf.mxu1 }
 0x4b5   : > { %v2436_v27 = vsel %vm425_vm2, %v2186_v22, -inf }
 0x4b6   : > { %2434 = vmax.xlane.f32.xlu0 %v2433_v25  ;;  %2437 = vmax.xlane.f32.xlu1 %v2436_v27  ;;  %v6684_v30 = vpop.f32.mrf.mxu1 }
 0x4b8   : > { %v2342_v46 = vpop.f32.mrf.mxu1 }
 0x4b9   : > { %v2442_v32 = vsel %vm425_vm2, %v2342_v46, -inf }
 0x4ba   : > { %2440 = vmax.xlane.f32.xlu0 %v2439_v31  ;;  %2443 = vmax.xlane.f32.xlu1 %v2442_v32  ;;  %v6694_v34 = vpop.f32.mrf.mxu1 }
 0x4be   : > { %2446 = vmax.xlane.f32.xlu0 %v2445_v36 }
 0x4cb   : > { %2576 = vrot.lane.b32.xlu1 %v7501_v16, %s7285_s14 }
 0x4cf   : > { %2728 = vrot.lane.b32.xlu1 %v7506_v20, %s7285_s14 }
 0x4d3   : > { %2804 = vrot.lane.b32.xlu1 %v7510_v23, %s7285_s14 }
 0x4d4   : > { %2652 = vrot.lane.b32.xlu0 %v7504_v19, %s7285_s14 }
 0x4d7   : > { %2956 = vrot.lane.b32.xlu1 %v7515_v26, %s7285_s14 }
 0x4d8   : > { %2880 = vrot.lane.b32.xlu0 %v7512_v24, %s7285_s14 }
 0x4db   : > { %3108 = vrot.lane.b32.xlu1 %v7521_v29, %s7285_s14 }
 0x4dc   : > { %3032 = vrot.lane.b32.xlu0 %v7518_v28, %s7285_s14  ;;  %s6201_s14 = sshll.u32 %s271_s13, 4  ;;  %s6202_s14 = int_to_ptr.vmem [resolvable:$true] %s6201_s14 }
 0x518   : > { %v2429_v38 = vpop.xlane.xlu1 %2428 }
 0x519   : > { %v2449_v48 = vsub.f32 %v1952_v63, %v2429_v38 }
 0x51b   : > { %v2458_v33 = vmul.f32 1.442695, %v2449_v48 }
 0x51d   : > { %7028 = vpow2.f32 %v2458_v33 }
 0x52a   : > { %v7790_v39 = vpop.eup %7028 }
 0x52b   : > { %v2475_v40 = vsel %vm425_vm2, %v7790_v39, 0.0 }
 0x52c   : > { %2476 = vadd.xlane.f32.xlu0 %v2475_v40 }
 0x537   : > { %v2426_v41 = vpop.xlane.xlu0 %2425 }
 0x538   : > { %v2448_v42 = vsub.f32 %v1874_v13, %v2426_v41 }
 0x53a   : > { %v2456_v43 = vmul.f32 1.442695, %v2448_v42 }
 0x53b   : > { %v2432_v44 = vpop.xlane.xlu0 %2431 }
 0x53c   : > { %7030 = vpow2.f32 %v2456_v43  ;;  %v2450_v45 = vsub.f32 %v2030_v17, %v2432_v44 }
 0x53e   : > { %v2460_v35 = vmul.f32 1.442695, %v2450_v45 }
 0x53f   : > { %v2438_v47 = vpop.xlane.xlu1 %2437  ;;  %v2435_v49 = vpop.xlane.xlu0 %2434 }
 0x540   : > { %7032 = vpow2.f32 %v2460_v35  ;;  %v2452_v50 = vsub.f32 %v2186_v22, %v2438_v47  ;;  %v2451_v51 = vsub.f32 %v2108_v2, %v2435_v49 }
 0x542   : > { %v2464_v53 = vmul.f32 1.442695, %v2452_v50  ;;  %v2462_v55 = vmul.f32 1.442695, %v2451_v51 }
 0x543   : > { %v2444_v56 = vpop.xlane.xlu1 %2443  ;;  %v2441_v58 = vpop.xlane.xlu0 %2440 }
 0x544   : > { %7034 = vpow2.f32 %v2464_v53  ;;  %v2454_v60 = vsub.f32 %v2342_v46, %v2444_v56  ;;  %v2453_v62 = vsub.f32 %v7765_v4, %v2441_v58 }
 0x545   : > { %7036 = vpow2.f32 %v2462_v55 }
 0x546   : > { %v2468_v63 = vmul.f32 1.442695, %v2454_v60  ;;  %v2466_v0 = vmul.f32 1.442695, %v2453_v62 }
 0x547   : > { %v2577_v1 = vpop.permute.xlu1 %2576  ;;  %v2447_v3 = vpop.xlane.xlu0 %2446 }
 0x548   : > { %7038 = vpow2.f32 %v2468_v63  ;;  %v2455_v5 = vsub.f32 %v7769_v7, %v2447_v3  ;;  %6701 = vmatpush3.msra.mxu1 %v2577_v1 }
 0x549   : > { %v7796_v8 = vpop.eup %7030  ;;  %7040 = vpow2.f32 %v2466_v0  ;;  %6710 = vmatprep.subr.mxu1 %v7279_v12 }
 0x54a   : > { %v2470_v2 = vmul.f32 1.442695, %v2455_v5  ;;  %v2472_v9 = vsel %vm425_vm2, %v7796_v8, 0.0 }
 0x54b   : > { %2473 = vadd.xlane.f32.xlu1 %v2472_v9  ;;  %v2653_v4 = vpop.permute.xlu0 %2652  ;;  %v7846_v34 = vpop.permute.xlu1 %2728 }
 0x54c   : > { %7042 = vpow2.f32 %v2470_v2  ;;  %6706 = vmatpush3.msra.mxu0 %v2653_v4 }
 0x54d   : > { %v7801_v11 = vpop.eup %7032  ;;  %6715 = vmatprep.subr.mxu0 %v7279_v12 }
 0x54e   : > { %v2478_v7 = vsel %vm425_vm2, %v7801_v11, 0.0 }
 0x54f   : > { %2479 = vadd.xlane.f32.xlu1 %v2478_v7  ;;  %v7842_v46 = vpop.permute.xlu0 %2880  ;;  %v2805_v38 = vpop.permute.xlu1 %2804 }
 0x551   : > { %v7806_v13 = vpop.eup %7034 }
 0x552   : > { %v7808_v14 = vpop.eup %7036  ;;  %v2484_v15 = vsel %vm425_vm2, %v7806_v13, 0.0 }
 0x553   : > { %2485 = vadd.xlane.f32.xlu1 %v2484_v15  ;;  %v2481_v17 = vsel %vm425_vm2, %v7808_v14, 0.0  ;;  %v7844_v31 = vpop.permute.xlu0 %3032  ;;  %v7850_v42 = vpop.permute.xlu1 %2956 }
 0x554   : > { %2482 = vadd.xlane.f32.xlu0 %v2481_v17 }
 0x555   : > { %v7814_v18 = vpop.eup %7038 }
 0x556   : > { %v7816_v21 = vpop.eup %7040  ;;  %v2490_v22 = vsel %vm425_vm2, %v7814_v18, 0.0 }
 0x557   : > { %2491 = vadd.xlane.f32.xlu1 %v2490_v22  ;;  %v2487_v25 = vsel %vm425_vm2, %v7816_v21, 0.0  ;;  %v7852_v35 = vpop.permute.xlu1 %3108 }
 0x558   : > { %2488 = vadd.xlane.f32.xlu0 %v2487_v25 }
 0x559   : > { %v7822_v27 = vpop.eup %7042 }
 0x55a   : > { %v2493_v30 = vsel %vm425_vm2, %v7822_v27, 0.0 }
 0x55c   : > { %2494 = vadd.xlane.f32.xlu0 %v2493_v30 }
 0x568   : > { %3264 = vrot.lane.b32.xlu1 %v7504_v19, %s7286_s7 }
 0x56c   : > { %3262 = vrot.lane.b32.xlu1 %v7504_v19, %s7287_s28 }
 0x570   : > { %3420 = vrot.lane.b32.xlu1 %v7510_v23, %s7286_s7 }
 0x572   : > { %3186 = vrot.lane.b32.xlu0 %v7501_v16, %s7286_s7 }
 0x574   : > { %3418 = vrot.lane.b32.xlu1 %v7510_v23, %s7287_s28 }
 0x576   : > { %3184 = vrot.lane.b32.xlu0 %v7501_v16, %s7287_s28 }
 0x578   : > { %3576 = vrot.lane.b32.xlu1 %v7515_v26, %s7286_s7 }
 0x57a   : > { %3342 = vrot.lane.b32.xlu0 %v7506_v20, %s7286_s7 }
 0x57c   : > { %3574 = vrot.lane.b32.xlu1 %v7515_v26, %s7287_s28 }
 0x57e   : > { %3340 = vrot.lane.b32.xlu0 %v7506_v20, %s7287_s28 }
 0x580   : > { %3732 = vrot.lane.b32.xlu1 %v7521_v29, %s7286_s7 }
 0x582   : > { %3498 = vrot.lane.b32.xlu0 %v7512_v24, %s7286_s7 }
 0x584   : > { %3730 = vrot.lane.b32.xlu1 %v7521_v29, %s7287_s28 }
 0x586   : > { %3496 = vrot.lane.b32.xlu0 %v7512_v24, %s7287_s28 }
 0x58a   : > { %3654 = vrot.lane.b32.xlu0 %v7518_v28, %s7286_s7 }
 0x58e   : > { %3652 = vrot.lane.b32.xlu0 %v7518_v28, %s7287_s28 }
 0x5b5   : > { %v2477_v32 = vpop.xlane.xlu0 %2476 }
 0x5b6   : > { %7044 = vrcp.f32 %v2477_v32 }
 0x5c3   : > { %v7045_v36 = vpop.eup %7044 }
 0x5c4   : > { %v2499_v48 = vmul.f32 %v7045_v36, %v7790_v39 }
 0x5c6   : > { %v2519_v33 = vsel %vm425_vm2, %v2499_v48, 0.0 }
 0x5c7   : > { %v2520_v40 = vrot.slane %v2519_v33, 4 }
 0x5c9   : > { %v2521_v41 = vadd.f32 %v2520_v40, %v2519_v33 }
 0x5cb   : > { %v2522_v43 = vrot.slane %v2521_v41, 2 }
 0x5cd   : > { %v2523_v44 = vadd.f32 %v2522_v43, %v2521_v41 }
 0x5cf   : > { %v2524_v45 = vrot.slane %v2523_v44, 1 }
 0x5d1   : > { %v2525_v47 = vadd.f32 %v2524_v45, %v2523_v44 }
 0x5d3   : > { %v2569_v49 = vmul.f32 0.125, %v2525_v47 }
 0x5d4   : > { %v2474_v50 = vpop.xlane.xlu1 %2473 }
 0x5d5   : > { %7046 = vrcp.f32 %v2474_v50  ;;  %6708 = vmatmul.mubr.msk.f32.vlgmr.msra.gmra.mxu0 %vm425_vm2, %v2569_v49 }
 0x5d6   : > { %6716 = vmatpush3.msra.mxu0 %v2805_v38  ;;  %6717 = vmatprep.mubr.msk.f32.mxu0 %vm7280_vm1, %v7279_v12 }
 0x5d7   : > { %6725 = vmatprep.subr.mxu0 %v7279_v12 }
 0x5d8   : > { %v2480_v39 = vpop.xlane.xlu1 %2479 }
 0x5d9   : > { %7048 = vrcp.f32 %v2480_v39 }
 0x5dc   : > { %v2486_v51 = vpop.xlane.xlu1 %2485 }
 0x5dd   : > { %7050 = vrcp.f32 %v2486_v51  ;;  %v2483_v53 = vpop.xlane.xlu0 %2482 }
 0x5de   : > { %7052 = vrcp.f32 %v2483_v53 }
 0x5e0   : > { %v2492_v55 = vpop.xlane.xlu1 %2491 }
 0x5e1   : > { %7054 = vrcp.f32 %v2492_v55  ;;  %v2489_v56 = vpop.xlane.xlu0 %2488 }
 0x5e2   : > { %v7047_v58 = vpop.eup %7046  ;;  %7056 = vrcp.f32 %v2489_v56 }
 0x5e3   : > { %v2497_v60 = vmul.f32 %v7047_v58, %v7796_v8 }
 0x5e4   : > { %v7865_v8 = vpop.permute.xlu1 %3264 }
 0x5e5   : > { %v2495_v62 = vpop.xlane.xlu0 %2494  ;;  %v2512_v63 = vsel %vm425_vm2, %v2497_v60, 0.0 }
 0x5e6   : > { %v7049_v0 = vpop.eup %7048  ;;  %7058 = vrcp.f32 %v2495_v62  ;;  %v2513_v1 = vrot.slane %v2512_v63, 4 }
 0x5e7   : > { %v2501_v3 = vmul.f32 %v7049_v0, %v7801_v11 }
 0x5e8   : > { %v2514_v5 = vadd.f32 %v2513_v1, %v2512_v63  ;;  %v7874_v50 = vpop.permute.xlu1 %3262 }
 0x5e9   : > { %v7861_v2 = vpop.permute.xlu0 %3186  ;;  %v2526_v9 = vsel %vm425_vm2, %v2501_v3, 0.0 }
 0x5ea   : > { %v7051_v4 = vpop.eup %7050  ;;  %v2515_v7 = vrot.slane %v2514_v5, 2  ;;  %v2527_v15 = vrot.slane %v2526_v9, 4 }
 0x5eb   : > { %v7053_v17 = vpop.eup %7052  ;;  %v2505_v22 = vmul.f32 %v7051_v4, %v7806_v13 }
 0x5ec   : > { %v2503_v25 = vmul.f32 %v7053_v17, %v7808_v14  ;;  %v2516_v30 = vadd.f32 %v2515_v7, %v2514_v5  ;;  %v2528_v32 = vadd.f32 %v2527_v15, %v2526_v9 }
 0x5ed   : > { %v7868_v36 = vpop.permute.xlu0 %3184  ;;  %v2540_v11 = vsel %vm425_vm2, %v2505_v22, 0.0  ;;  %v3421_v22 = vpop.permute.xlu1 %3420 }
 0x5ee   : > { %v7055_v38 = vpop.eup %7054  ;;  %v2517_v48 = vrot.slane %v2516_v30, 1  ;;  %v2529_v33 = vrot.slane %v2528_v32, 2  ;;  %v2533_v40 = vsel %vm425_vm2, %v2503_v25, 0.0  ;;  %v2541_v41 = vrot.slane %v2540_v11, 4 }
 0x5ef   : > { %v7057_v43 = vpop.eup %7056  ;;  %v2509_v44 = vmul.f32 %v7055_v38, %v7814_v18  ;;  %v2534_v13 = vrot.slane %v2533_v40, 4 }
 0x5f0   : > { %v2507_v45 = vmul.f32 %v7057_v43, %v7816_v21  ;;  %v2518_v47 = vadd.f32 %v2517_v48, %v2516_v30  ;;  %v2530_v14 = vadd.f32 %v2529_v33, %v2528_v32  ;;  %v2542_v49 = vadd.f32 %v2541_v41, %v2540_v11 }
 0x5f1   : > { %v2535_v39 = vadd.f32 %v2534_v13, %v2533_v40  ;;  %v2554_v51 = vsel %vm425_vm2, %v2509_v44, 0.0  ;;  %v7877_v53 = vpop.permute.xlu0 %3342 }
 0x5f2   : > { %v2568_v55 = vmul.f32 0.125, %v2518_v47  ;;  %v2531_v56 = vrot.slane %v2530_v14, 1  ;;  %v2543_v58 = vrot.slane %v2542_v49, 2  ;;  %v2547_v60 = vsel %vm425_vm2, %v2507_v45, 0.0  ;;  %v3419_v47 = vpop.permute.xlu1 %3418 }
 0x5f3   : > { %v7059_v62 = vpop.eup %7058  ;;  %v2536_v18 = vrot.slane %v2535_v39, 2  ;;  %v2548_v63 = vrot.slane %v2547_v60, 4  ;;  %v2555_v0 = vrot.slane %v2554_v51, 4 }
 0x5f4   : > { %v2511_v21 = vmul.f32 %v7059_v62, %v7822_v27  ;;  %6703 = vmatmul.mubr.msk.f32.vlgmr.msra.gmra.mxu1 %vm425_vm2, %v2568_v55  ;;  %v2532_v1 = vadd.f32 %v2531_v56, %v2530_v14  ;;  %v2544_v3 = vadd.f32 %v2543_v58, %v2542_v49 }
 0x5f5   : > { %6711 = vmatpush3.msra.mxu1 %v7846_v34  ;;  %6712 = vmatprep.mubr.msk.f32.mxu1 %vm7280_vm1, %v7279_v12  ;;  %v2537_v5 = vadd.f32 %v2536_v18, %v2535_v39  ;;  %v2549_v9 = vadd.f32 %v2548_v63, %v2547_v60  ;;  %v2556_v4 = vadd.f32 %v2555_v0, %v2554_v51  ;;  %v3341_v11 = vpop.permute.xlu0 %3340 }
 0x5f6   : > { %6720 = vmatprep.subr.mxu1 %v7279_v12  ;;  %v2570_v7 = vmul.f32 0.125, %v2532_v1  ;;  %v2545_v15 = vrot.slane %v2544_v3, 1  ;;  %v2561_v17 = vsel %vm425_vm2, %v2511_v21, 0.0 }
 0x5f7   : > { %v2538_v27 = vrot.slane %v2537_v5, 1  ;;  %v2550_v25 = vrot.slane %v2549_v9, 2  ;;  %v2557_v30 = vrot.slane %v2556_v4, 2  ;;  %v2562_v32 = vrot.slane %v2561_v17, 4 }
 0x5f8   : > { %6713 = vmatmul.mubr.msk.f32.vlgmr.msra.gmra.mxu1 %vm425_vm2, %v2570_v7  ;;  %v2546_v34 = vadd.f32 %v2545_v15, %v2544_v3 }
 0x5f9   : > { %6721 = vmatpush3.msra.mxu1 %v7842_v46  ;;  %6722 = vmatprep.mubr.msk.f32.mxu1 %vm7280_vm1, %v7279_v12  ;;  %v2539_v38 = vadd.f32 %v2538_v27, %v2537_v5  ;;  %v2551_v48 = vadd.f32 %v2550_v25, %v2549_v9  ;;  %v2558_v33 = vadd.f32 %v2557_v30, %v2556_v4  ;;  %v3499_v49 = vpop.permute.xlu0 %3498 }
 0x5fa   : > { %6730 = vmatprep.subr.mxu1 %v7279_v12  ;;  %v2572_v40 = vmul.f32 0.125, %v2546_v34  ;;  %v2563_v41 = vadd.f32 %v2562_v32, %v2561_v17 }
 0x5fb   : > { %v2571_v43 = vmul.f32 0.125, %v2539_v38  ;;  %v2552_v44 = vrot.slane %v2551_v48, 1  ;;  %v2559_v13 = vrot.slane %v2558_v33, 1 }
 0x5fc   : > { %6723 = vmatmul.mubr.msk.f32.vlgmr.msra.gmra.mxu1 %vm425_vm2, %v2572_v40  ;;  %v2564_v45 = vrot.slane %v2563_v41, 2 }
 0x5fd   : > { %6718 = vmatmul.mubr.msk.f32.vlgmr.msra.gmra.mxu0 %vm425_vm2, %v2571_v43  ;;  %6731 = vmatpush3.msra.mxu1 %v7844_v31  ;;  %v2553_v46 = vadd.f32 %v2552_v44, %v2551_v48  ;;  %v2560_v14 = vadd.f32 %v2559_v13, %v2558_v33  ;;  %v3497_v58 = vpop.permute.xlu0 %3496 }
 0x5fe   : > { %6726 = vmatpush3.msra.mxu0 %v7850_v42  ;;  %6727 = vmatprep.mubr.msk.f32.mxu0 %vm7280_vm1, %v7279_v12  ;;  %v2565_v39 = vadd.f32 %v2564_v45, %v2563_v41  ;;  %v3577_v42 = vpop.permute.xlu1 %3576 }
 0x5ff   : > { %6732 = vmatprep.mubr.msk.f32.mxu1 %vm7280_vm1, %v7279_v12  ;;  %6735 = vmatprep.subr.mxu0 %v7279_v12  ;;  %v2573_v51 = vmul.f32 0.125, %v2553_v46  ;;  %v2574_v55 = vmul.f32 0.125, %v2560_v14 }
 0x600   : > { %6740 = vmatprep.subr.mxu1 %v7279_v12  ;;  %v2566_v56 = vrot.slane %v2565_v39, 1 }
 0x601   : > { %6728 = vmatmul.mubr.msk.f32.vlgmr.msra.gmra.mxu0 %vm425_vm2, %v2573_v51  ;;  %6733 = vmatmul.mubr.msk.f32.vlgmr.msra.gmra.mxu1 %vm425_vm2, %v2574_v55 }
 0x602   : > { %6736 = vmatpush3.msra.mxu0 %v7852_v35  ;;  %6741 = vmatpush3.xpose.msk.msra.mxu1 %vm425_vm2, %v7861_v2  ;;  %v2567_v31 = vadd.f32 %v2566_v56, %v2565_v39  ;;  %v3575_v35 = vpop.permute.xlu1 %3574  ;;  %v3655_v2 = vpop.permute.xlu0 %3654 }
 0x603   : > { %6737 = vmatprep.mubr.msk.f32.mxu0 %vm7280_vm1, %v7279_v12  ;;  %6742 = vmatprep.mubr.msk.f32.mxu1 %vm7280_vm1, %v7279_v12 }
 0x604   : > { %6745 = vmatprep.subr.mxu0 %v7279_v12  ;;  %6750 = vmatprep.subr.mxu1 %v7279_v12  ;;  %v2575_v60 = vmul.f32 0.125, %v2567_v31 }
 0x605   : > { %6743 = vmatmul.mubr.msk.f32.vlgmr.msra.gmra.mxu1 %vm425_vm2, %v7868_v36 }
 0x606   : > { %6738 = vmatmul.mubr.msk.f32.vlgmr.msra.gmra.mxu0 %vm425_vm2, %v2575_v60  ;;  %6751 = vmatpush3.xpose.msk.msra.mxu1 %vm425_vm2, %v7877_v53  ;;  %v3653_v36 = vpop.permute.xlu0 %3652 }
 0x607   : > { %6746 = vmatpush3.xpose.msk.msra.mxu0 %vm425_vm2, %v7865_v8  ;;  %6747 = vmatprep.mubr.msk.f32.mxu0 %vm7280_vm1, %v7279_v12  ;;  %v3733_v8 = vpop.permute.xlu1 %3732 }
 0x608   : > { %6752 = vmatprep.mubr.msk.f32.mxu1 %vm7280_vm1, %v7279_v12  ;;  %6755 = vmatprep.subr.mxu0 %v7279_v12 }
 0x609   : > { %6760 = vmatprep.subr.mxu1 %v7279_v12  ;;  %6753 = vmatmul.mubr.msk.f32.vlgmr.msra.gmra.mxu1 %vm425_vm2, %v3341_v11 }
 0x60a   : > { %6748 = vmatmul.mubr.msk.f32.vlgmr.msra.gmra.mxu0 %vm425_vm2, %v7874_v50  ;;  %6761 = vmatpush3.xpose.msk.msra.mxu1 %vm425_vm2, %v3499_v49 }
 0x60b   : > { %6756 = vmatpush3.xpose.msk.msra.mxu0 %vm425_vm2, %v3421_v22  ;;  %6757 = vmatprep.mubr.msk.f32.mxu0 %vm7280_vm1, %v7279_v12  ;;  %v3731_v50 = vpop.permute.xlu1 %3730 }
 0x60c   : > { %6762 = vmatprep.mubr.msk.f32.mxu1 %vm7280_vm1, %v7279_v12  ;;  %6765 = vmatprep.subr.mxu0 %v7279_v12 }
 0x60d   : > { %6770 = vmatprep.subr.mxu1 %v7279_v12  ;;  %6763 = vmatmul.mubr.msk.f32.vlgmr.msra.gmra.mxu1 %vm425_vm2, %v3497_v58 }
 0x60e   : > { %6758 = vmatmul.mubr.msk.f32.vlgmr.msra.gmra.mxu0 %vm425_vm2, %v3419_v47  ;;  %6771 = vmatpush3.xpose.msk.msra.mxu1 %vm425_vm2, %v3655_v2 }
 0x60f   : > { %6766 = vmatpush3.xpose.msk.msra.mxu0 %vm425_vm2, %v3577_v42  ;;  %6767 = vmatprep.mubr.msk.f32.mxu0 %vm7280_vm1, %v7279_v12 }
 0x610   : > { %6772 = vmatprep.mubr.msk.f32.mxu1 %vm7280_vm1, %v7279_v12  ;;  %6775 = vmatprep.subr.mxu0 %v7279_v12 }
 0x611   : > { %6773 = vmatmul.mubr.msk.f32.vlgmr.msra.gmra.mxu1 %vm425_vm2, %v3653_v36  ;;  %6780 = vmatprep.subr.mxu1 %v7279_v12 }
 0x612   : > { %6768 = vmatmul.mubr.msk.f32.vlgmr.msra.gmra.mxu0 %vm425_vm2, %v3575_v35  ;;  %6782 = vmatprep.mubr.msk.f32.mxu1 %vm7280_vm1, %v7279_v12 }
 0x613   : > { %6776 = vmatpush3.xpose.msk.msra.mxu0 %vm425_vm2, %v3733_v8  ;;  %6777 = vmatprep.mubr.msk.f32.mxu0 %vm7280_vm1, %v7279_v12 }
 0x614   : > { %6785 = vmatprep.subr.mxu0 %v7279_v12 }
 0x616   : > { %6778 = vmatmul.mubr.msk.f32.vlgmr.msra.gmra.mxu0 %vm425_vm2, %v3731_v50 }
 0x617   : > { %6787 = vmatprep.mubr.msk.f32.mxu0 %vm7280_vm1, %v7279_v12 }
 0x695   : > { %v7958_v53 = vpop.f32.mrf.mxu0 }
 0x697   : > { %v6709_v62 = vpop.f32.mrf.mxu0 }
 0x6b4   : > { %v7960_v18 = vpop.f32.mrf.mxu1 }
 0x6b6   : > { %v6704_v63 = vpop.f32.mrf.mxu1 }
 0x6b8   : > { %v7962_v0 = vpop.f32.mrf.mxu1 }
 0x6ba   : > { %v6714_v21 = vpop.f32.mrf.mxu1 }
 0x6bc   : > { %v7964_v1 = vpop.f32.mrf.mxu1 }
 0x6bd   : > { %v7966_v3 = vpop.f32.mrf.mxu0 }
 0x6be   : > { %v6724_v5 = vpop.f32.mrf.mxu1 }
 0x6bf   : > { %v6719_v9 = vpop.f32.mrf.mxu0 }
 0x6c1   : > { %v7968_v4 = vpop.f32.mrf.mxu0  ;;  %v7970_v7 = vpop.f32.mrf.mxu1 }
 0x6c3   : > { %v6729_v15 = vpop.f32.mrf.mxu0  ;;  %v6734_v17 = vpop.f32.mrf.mxu1 }
 0x6c5   : > { %v3258_v22 = vpop.f32.mrf.mxu1 }
 0x6c6   : > { %v7972_v27 = vpop.f32.mrf.mxu0  ;;  %v3808_v25 = vsel %vm425_vm2, %v3258_v22, -inf }
 0x6c7   : > { %3809 = vmax.xlane.f32.xlu0 %v3808_v25  ;;  %v6744_v30 = vpop.f32.mrf.mxu1 }
 0x6c8   : > { %v6739_v32 = vpop.f32.mrf.mxu0 }
 0x6c9   : > { %v3414_v11 = vpop.f32.mrf.mxu1 }
 0x6ca   : > { %v3336_v34 = vpop.f32.mrf.mxu0  ;;  %v3814_v38 = vsel %vm425_vm2, %v3414_v11, -inf }
 0x6cb   : > { %v3811_v48 = vsel %vm425_vm2, %v3336_v34, -inf  ;;  %3815 = vmax.xlane.f32.xlu0 %v3814_v38  ;;  %v6754_v33 = vpop.f32.mrf.mxu1 }
 0x6cc   : > { %3812 = vmax.xlane.f32.xlu1 %v3811_v48  ;;  %v6749_v40 = vpop.f32.mrf.mxu0 }
 0x6cd   : > { %v3570_v41 = vpop.f32.mrf.mxu1 }
 0x6ce   : > { %v3492_v43 = vpop.f32.mrf.mxu0  ;;  %v3820_v44 = vsel %vm425_vm2, %v3570_v41, -inf }
 0x6cf   : > { %v3817_v13 = vsel %vm425_vm2, %v3492_v43, -inf  ;;  %v6764_v45 = vpop.f32.mrf.mxu1 }
 0x6d0   : > { %v6759_v47 = vpop.f32.mrf.mxu0  ;;  %3818 = vmax.xlane.f32.xlu0 %v3817_v13  ;;  %3821 = vmax.xlane.f32.xlu1 %v3820_v44 }
 0x6d1   : > { %v3726_v46 = vpop.f32.mrf.mxu1 }
 0x6d2   : > { %v3648_v14 = vpop.f32.mrf.mxu0  ;;  %v3826_v49 = vsel %vm425_vm2, %v3726_v46, -inf }
 0x6d3   : > { %v3823_v39 = vsel %vm425_vm2, %v3648_v14, -inf  ;;  %v6774_v51 = vpop.f32.mrf.mxu1 }
 0x6d4   : > { %v6769_v55 = vpop.f32.mrf.mxu0  ;;  %3824 = vmax.xlane.f32.xlu0 %v3823_v39  ;;  %3827 = vmax.xlane.f32.xlu1 %v3826_v49 }
 0x6d6   : > { %v3804_v56 = vpop.f32.mrf.mxu0 }
 0x6d7   : > { %v3829_v31 = vsel %vm425_vm2, %v3804_v56, -inf }
 0x6d8   : > { %v6779_v42 = vpop.f32.mrf.mxu0  ;;  %3830 = vmax.xlane.f32.xlu0 %v3829_v31 }
 0x6e5   : > { %3960 = vrot.lane.b32.xlu1 %v7501_v16, %s7288_s11 }
 0x6e9   : > { %4112 = vrot.lane.b32.xlu1 %v7506_v20, %s7288_s11 }
 0x6ed   : > { %4188 = vrot.lane.b32.xlu1 %v7510_v23, %s7288_s11 }
 0x6ee   : > { %4036 = vrot.lane.b32.xlu0 %v7504_v19, %s7288_s11 }
 0x6f1   : > { %4340 = vrot.lane.b32.xlu1 %v7515_v26, %s7288_s11 }
 0x6f2   : > { %4264 = vrot.lane.b32.xlu0 %v7512_v24, %s7288_s11 }
 0x6f5   : > { %4492 = vrot.lane.b32.xlu1 %v7521_v29, %s7288_s11 }
 0x6f6   : > { %4416 = vrot.lane.b32.xlu0 %v7518_v28, %s7288_s11  ;;  %s8347_s11 = scalar_lea.hbm %s8390_s5, %s6411_s12 }
 0x750   : > { %v3810_v58 = vpop.xlane.xlu0 %3809 }
 0x751   : > { %v3832_v60 = vsub.f32 %v3258_v22, %v3810_v58 }
 0x753   : > { %v3840_v35 = vmul.f32 1.442695, %v3832_v60 }
 0x754   : > { %v3816_v2 = vpop.xlane.xlu0 %3815 }
 0x755   : > { %7060 = vpow2.f32 %v3840_v35  ;;  %v3813_v8 = vpop.xlane.xlu1 %3812  ;;  %v3834_v36 = vsub.f32 %v3414_v11, %v3816_v2 }
 0x756   : > { %v3833_v50 = vsub.f32 %v3336_v34, %v3813_v8 }
 0x757   : > { %v3844_v62 = vmul.f32 1.442695, %v3834_v36 }
 0x758   : > { %v3842_v63 = vmul.f32 1.442695, %v3833_v50 }
 0x759   : > { %7062 = vpow2.f32 %v3844_v62  ;;  %v3822_v21 = vpop.xlane.xlu1 %3821  ;;  %v3819_v5 = vpop.xlane.xlu0 %3818 }
 0x75a   : > { %7064 = vpow2.f32 %v3842_v63  ;;  %v3836_v9 = vsub.f32 %v3570_v41, %v3822_v21  ;;  %v3835_v15 = vsub.f32 %v3492_v43, %v3819_v5 }
 0x75c   : > { %v3848_v17 = vmul.f32 1.442695, %v3836_v9  ;;  %v3846_v25 = vmul.f32 1.442695, %v3835_v15 }
 0x75d   : > { %v3828_v30 = vpop.xlane.xlu1 %3827  ;;  %v3825_v32 = vpop.xlane.xlu0 %3824 }
 0x75e   : > { %7066 = vpow2.f32 %v3848_v17  ;;  %v3838_v22 = vsub.f32 %v3726_v46, %v3828_v30  ;;  %v3837_v38 = vsub.f32 %v3648_v14, %v3825_v32 }
 0x75f   : > { %7068 = vpow2.f32 %v3846_v25 }
 0x760   : > { %v3852_v48 = vmul.f32 1.442695, %v3838_v22  ;;  %v3850_v33 = vmul.f32 1.442695, %v3837_v38 }
 0x761   : > { %v3961_v11 = vpop.permute.xlu1 %3960  ;;  %v3831_v34 = vpop.xlane.xlu0 %3830 }
 0x762   : > { %v7990_v40 = vpop.eup %7060  ;;  %7070 = vpow2.f32 %v3852_v48  ;;  %v3839_v44 = vsub.f32 %v3804_v56, %v3831_v34  ;;  %6781 = vmatpush3.msra.mxu1 %v3961_v11 }
 0x763   : > { %7072 = vpow2.f32 %v3850_v33  ;;  %v3856_v41 = vsel %vm425_vm2, %v7990_v40, 0.0  ;;  %6790 = vmatprep.subr.mxu1 %v7279_v12 }
 0x764   : > { %v3854_v43 = vmul.f32 1.442695, %v3839_v44  ;;  %3857 = vadd.xlane.f32.xlu1 %v3856_v41 }
 0x765   : > { %v4037_v13 = vpop.permute.xlu0 %4036  ;;  %v8040_v2 = vpop.permute.xlu1 %4112 }
 0x766   : > { %v7995_v45 = vpop.eup %7062  ;;  %7074 = vpow2.f32 %v3854_v43  ;;  %6786 = vmatpush3.msra.mxu0 %v4037_v13 }
 0x767   : > { %v7997_v47 = vpop.eup %7064  ;;  %v3862_v46 = vsel %vm425_vm2, %v7995_v45, 0.0  ;;  %6795 = vmatprep.subr.mxu0 %v7279_v12 }
 0x768   : > { %v3859_v14 = vsel %vm425_vm2, %v7997_v47, 0.0  ;;  %3863 = vadd.xlane.f32.xlu1 %v3862_v46 }
 0x769   : > { %3860 = vadd.xlane.f32.xlu0 %v3859_v14  ;;  %v8042_v8 = vpop.permute.xlu1 %4188  ;;  %v8046_v50 = vpop.permute.xlu0 %4264 }
 0x76b   : > { %v8004_v49 = vpop.eup %7066 }
 0x76c   : > { %v8006_v39 = vpop.eup %7068  ;;  %v3868_v51 = vsel %vm425_vm2, %v8004_v49, 0.0 }
 0x76d   : > { %3869 = vadd.xlane.f32.xlu1 %v3868_v51  ;;  %v3865_v55 = vsel %vm425_vm2, %v8006_v39, 0.0  ;;  %v8044_v36 = vpop.permute.xlu1 %4340  ;;  %v8050_v21 = vpop.permute.xlu0 %4416 }
 0x76e   : > { %3866 = vadd.xlane.f32.xlu0 %v3865_v55 }
 0x76f   : > { %v8012_v56 = vpop.eup %7070 }
 0x770   : > { %v8014_v31 = vpop.eup %7072  ;;  %v3874_v42 = vsel %vm425_vm2, %v8012_v56, 0.0 }
 0x771   : > { %3875 = vadd.xlane.f32.xlu1 %v3874_v42  ;;  %v3871_v58 = vsel %vm425_vm2, %v8014_v31, 0.0  ;;  %v8048_v62 = vpop.permute.xlu1 %4492 }
 0x772   : > { %3872 = vadd.xlane.f32.xlu0 %v3871_v58 }
 0x773   : > { %v8020_v60 = vpop.eup %7074 }
 0x774   : > { %v3877_v35 = vsel %vm425_vm2, %v8020_v60, 0.0 }
 0x776   : > { %3878 = vadd.xlane.f32.xlu0 %v3877_v35 }
 0x782   : > { %4648 = vrot.lane.b32.xlu1 %v7504_v19, %s7289_s17 }
 0x786   : > { %4646 = vrot.lane.b32.xlu1 %v7504_v19, %s7290_s16 }
 0x78a   : > { %4804 = vrot.lane.b32.xlu1 %v7510_v23, %s7289_s17 }
 0x78c   : > { %4570 = vrot.lane.b32.xlu0 %v7501_v16, %s7289_s17 }
 0x78e   : > { %4802 = vrot.lane.b32.xlu1 %v7510_v23, %s7290_s16 }
 0x790   : > { %4568 = vrot.lane.b32.xlu0 %v7501_v16, %s7290_s16 }
 0x792   : > { %4960 = vrot.lane.b32.xlu1 %v7515_v26, %s7289_s17 }
 0x794   : > { %4726 = vrot.lane.b32.xlu0 %v7506_v20, %s7289_s17 }
 0x796   : > { %4958 = vrot.lane.b32.xlu1 %v7515_v26, %s7290_s16 }
 0x798   : > { %4724 = vrot.lane.b32.xlu0 %v7506_v20, %s7290_s16 }
 0x79a   : > { %5116 = vrot.lane.b32.xlu1 %v7521_v29, %s7289_s17 }
 0x79c   : > { %4882 = vrot.lane.b32.xlu0 %v7512_v24, %s7289_s17 }
 0x79e   : > { %5114 = vrot.lane.b32.xlu1 %v7521_v29, %s7290_s16 }
 0x7a0   : > { %4880 = vrot.lane.b32.xlu0 %v7512_v24, %s7290_s16 }
 0x7a4   : > { %5038 = vrot.lane.b32.xlu0 %v7518_v28, %s7289_s17  ;;  %s6188_s17 = scalar_lea.sflag [#allocation4], %s7462_s30 }
 0x7a8   : > { %5036 = vrot.lane.b32.xlu0 %v7518_v28, %s7290_s16  ;;  %s7204_s16 = scalar_lea.vmem %s6202_s14, 128 }
 0x7a9   : > { %p7205_p5 = scmp.ne.s32.totalorder %s6202_s14, %s7204_s16 }
 0x7ab   : > { %p7206_p7 = pnand %p7205_p5, %p8407_p2 }
 0x7ad   : > { %p7207_p12 = pneg %p7206_p7 }
 0x7ed   : > { %v3858_v63 = vpop.xlane.xlu1 %3857 }
 0x7ee   : > { %7076 = vrcp.f32 %v3858_v63 }
 0x7f1   : > { %v3864_v5 = vpop.xlane.xlu1 %3863 }
 0x7f2   : > { %7078 = vrcp.f32 %v3864_v5  ;;  %v3861_v9 = vpop.xlane.xlu0 %3860 }
 0x7f3   : > { %7080 = vrcp.f32 %v3861_v9 }
 0x7f6   : > { %v3870_v15 = vpop.xlane.xlu1 %3869 }
 0x7f7   : > { %7082 = vrcp.f32 %v3870_v15  ;;  %v3867_v17 = vpop.xlane.xlu0 %3866 }
 0x7f8   : > { %7084 = vrcp.f32 %v3867_v17 }
 0x7fa   : > { %v3876_v25 = vpop.xlane.xlu1 %3875 }
 0x7fb   : > { %v7077_v30 = vpop.eup %7076  ;;  %7086 = vrcp.f32 %v3876_v25  ;;  %v3873_v32 = vpop.xlane.xlu0 %3872 }
 0x7fc   : > { %v3881_v22 = vmul.f32 %v7077_v30, %v7990_v40  ;;  %7088 = vrcp.f32 %v3873_v32 }
 0x7fe   : > { %v3896_v38 = vsel %vm425_vm2, %v3881_v22, 0.0  ;;  %v8061_v63 = vpop.permute.xlu1 %4648 }
 0x7ff   : > { %v7079_v48 = vpop.eup %7078  ;;  %v3897_v33 = vrot.slane %v3896_v38, 4  ;;  %v3879_v11 = vpop.xlane.xlu0 %3878 }
 0x800   : > { %v7081_v34 = vpop.eup %7080  ;;  %v3885_v44 = vmul.f32 %v7079_v48, %v7995_v45  ;;  %7090 = vrcp.f32 %v3879_v11 }
 0x801   : > { %v3883_v41 = vmul.f32 %v7081_v34, %v7997_v47  ;;  %v3898_v43 = vadd.f32 %v3897_v33, %v3896_v38 }
 0x802   : > { %v3910_v13 = vsel %vm425_vm2, %v3885_v44, 0.0 }
 0x803   : > { %v3911_v46 = vrot.slane %v3910_v13, 4  ;;  %v3903_v14 = vsel %vm425_vm2, %v3883_v41, 0.0  ;;  %v8058_v51 = vpop.permute.xlu0 %4570  ;;  %v3899_v40 = vrot.slane %v3898_v43, 2 }
 0x804   : > { %v7083_v55 = vpop.eup %7082  ;;  %v3904_v42 = vrot.slane %v3903_v14, 4 }
 0x805   : > { %v7085_v58 = vpop.eup %7084  ;;  %v3889_v35 = vmul.f32 %v7083_v55, %v8004_v49  ;;  %v3900_v45 = vadd.f32 %v3899_v40, %v3898_v43  ;;  %v3912_v5 = vadd.f32 %v3911_v46, %v3910_v13  ;;  %v8071_v46 = vpop.permute.xlu1 %4646 }
 0x806   : > { %v3887_v47 = vmul.f32 %v7085_v58, %v8006_v39  ;;  %v3905_v9 = vadd.f32 %v3904_v42, %v3903_v14 }
 0x807   : > { %v3924_v15 = vsel %vm425_vm2, %v3889_v35, 0.0  ;;  %v8065_v17 = vpop.permute.xlu0 %4568  ;;  %v3901_v25 = vrot.slane %v3900_v45, 1  ;;  %v3913_v30 = vrot.slane %v3912_v5, 2 }
 0x808   : > { %v7087_v32 = vpop.eup %7086  ;;  %v3925_v22 = vrot.slane %v3924_v15, 4  ;;  %v3917_v38 = vsel %vm425_vm2, %v3887_v47, 0.0  ;;  %v3906_v48 = vrot.slane %v3905_v9, 2 }
 0x809   : > { %v7089_v33 = vpop.eup %7088  ;;  %v3918_v49 = vrot.slane %v3917_v38, 4  ;;  %v3893_v11 = vmul.f32 %v7087_v32, %v8012_v56  ;;  %v3902_v34 = vadd.f32 %v3901_v25, %v3900_v45  ;;  %v3914_v44 = vadd.f32 %v3913_v30, %v3912_v5 }
 0x80a   : > { %v3891_v39 = vmul.f32 %v7089_v33, %v8014_v31  ;;  %v3907_v41 = vadd.f32 %v3906_v48, %v3905_v9  ;;  %v3926_v43 = vadd.f32 %v3925_v22, %v3924_v15 }
 0x80b   : > { %v3938_v13 = vsel %vm425_vm2, %v3893_v11, 0.0  ;;  %v3952_v14 = vmul.f32 0.125, %v3902_v34  ;;  %v3915_v40 = vrot.slane %v3914_v44, 1  ;;  %v3919_v55 = vadd.f32 %v3918_v49, %v3917_v38  ;;  %v8074_v35 = vpop.permute.xlu0 %4726 }
 0x80c   : > { %v3939_v42 = vrot.slane %v3938_v13, 4  ;;  %v3931_v58 = vsel %vm425_vm2, %v3891_v39, 0.0  ;;  %v3908_v47 = vrot.slane %v3907_v41, 1  ;;  %v3927_v56 = vrot.slane %v3926_v43, 2 }
 0x80d   : > { %v7091_v45 = vpop.eup %7090  ;;  %v3932_v5 = vrot.slane %v3931_v58, 4  ;;  %6783 = vmatmul.mubr.msk.f32.vlgmr.msra.gmra.mxu1 %vm425_vm2, %v3952_v14  ;;  %v3916_v31 = vadd.f32 %v3915_v40, %v3914_v44  ;;  %v3920_v9 = vrot.slane %v3919_v55, 2  ;;  %v8083_v44 = vpop.permute.xlu1 %4804 }
 0x80e   : > { %v3895_v15 = vmul.f32 %v7091_v45, %v8020_v60  ;;  %6791 = vmatpush3.msra.mxu1 %v8040_v2  ;;  %6792 = vmatprep.mubr.msk.f32.mxu1 %vm7280_vm1, %v7279_v12  ;;  %v3909_v25 = vadd.f32 %v3908_v47, %v3907_v41  ;;  %v3928_v30 = vadd.f32 %v3927_v56, %v3926_v43 }
 0x80f   : > { %6800 = vmatprep.subr.mxu1 %v7279_v12  ;;  %v3954_v32 = vmul.f32 0.125, %v3916_v31  ;;  %v3921_v22 = vadd.f32 %v3920_v9, %v3919_v55  ;;  %v3933_v38 = vadd.f32 %v3932_v5, %v3931_v58  ;;  %v3940_v48 = vadd.f32 %v3939_v42, %v3938_v13  ;;  %v4725_v41 = vpop.permute.xlu0 %4724 }
 0x810   : > { %v3945_v33 = vsel %vm425_vm2, %v3895_v15, 0.0  ;;  %v3953_v49 = vmul.f32 0.125, %v3909_v25  ;;  %v3929_v11 = vrot.slane %v3928_v30, 1 }
 0x811   : > { %v3946_v34 = vrot.slane %v3945_v33, 4  ;;  %6793 = vmatmul.mubr.msk.f32.vlgmr.msra.gmra.mxu1 %vm425_vm2, %v3954_v32  ;;  %v3922_v60 = vrot.slane %v3921_v22, 1  ;;  %v3934_v2 = vrot.slane %v3933_v38, 2  ;;  %v3941_v39 = vrot.slane %v3940_v48, 2  ;;  %v4803_v56 = vpop.permute.xlu1 %4802 }
 0x812   : > { %6788 = vmatmul.mubr.msk.f32.vlgmr.msra.gmra.mxu0 %vm425_vm2, %v3953_v49  ;;  %6801 = vmatpush3.msra.mxu1 %v8046_v50  ;;  %v3930_v43 = vadd.f32 %v3929_v11, %v3928_v30 }
 0x813   : > { %6796 = vmatpush3.msra.mxu0 %v8042_v8  ;;  %6797 = vmatprep.mubr.msk.f32.mxu0 %vm7280_vm1, %v7279_v12  ;;  %v3923_v13 = vadd.f32 %v3922_v60, %v3921_v22  ;;  %v3935_v14 = vadd.f32 %v3934_v2, %v3933_v38  ;;  %v3942_v40 = vadd.f32 %v3941_v39, %v3940_v48  ;;  %v4883_v31 = vpop.permute.xlu0 %4882 }
 0x814   : > { %6802 = vmatprep.mubr.msk.f32.mxu1 %vm7280_vm1, %v7279_v12  ;;  %6805 = vmatprep.subr.mxu0 %v7279_v12  ;;  %v3956_v55 = vmul.f32 0.125, %v3930_v43  ;;  %v3947_v42 = vadd.f32 %v3946_v34, %v3945_v33 }
 0x815   : > { %6810 = vmatprep.subr.mxu1 %v7279_v12  ;;  %v3955_v58 = vmul.f32 0.125, %v3923_v13  ;;  %v3936_v50 = vrot.slane %v3935_v14, 1  ;;  %v3943_v47 = vrot.slane %v3942_v40, 1 }
 0x816   : > { %6803 = vmatmul.mubr.msk.f32.vlgmr.msra.gmra.mxu1 %vm425_vm2, %v3956_v55  ;;  %v3948_v8 = vrot.slane %v3947_v42, 2 }
 0x817   : > { %6798 = vmatmul.mubr.msk.f32.vlgmr.msra.gmra.mxu0 %vm425_vm2, %v3955_v58  ;;  %6811 = vmatpush3.msra.mxu1 %v8050_v21  ;;  %v3937_v45 = vadd.f32 %v3936_v50, %v3935_v14  ;;  %v3944_v5 = vadd.f32 %v3943_v47, %v3942_v40  ;;  %v4961_v21 = vpop.permute.xlu1 %4960  ;;  %v4881_v32 = vpop.permute.xlu0 %4880 }
 0x818   : > { %6806 = vmatpush3.msra.mxu0 %v8044_v36  ;;  %6807 = vmatprep.mubr.msk.f32.mxu0 %vm7280_vm1, %v7279_v12  ;;  %v3949_v9 = vadd.f32 %v3948_v8, %v3947_v42 }
 0x819   : > { %6812 = vmatprep.mubr.msk.f32.mxu1 %vm7280_vm1, %v7279_v12  ;;  %6815 = vmatprep.subr.mxu0 %v7279_v12  ;;  %v3957_v15 = vmul.f32 0.125, %v3937_v45  ;;  %v3958_v25 = vmul.f32 0.125, %v3944_v5 }
 0x81a   : > { %6820 = vmatprep.subr.mxu1 %v7279_v12  ;;  %v3950_v30 = vrot.slane %v3949_v9, 1 }
 0x81b   : > { %6808 = vmatmul.mubr.msk.f32.vlgmr.msra.gmra.mxu0 %vm425_vm2, %v3957_v15  ;;  %6813 = vmatmul.mubr.msk.f32.vlgmr.msra.gmra.mxu1 %vm425_vm2, %v3958_v25 }
 0x81c   : > { %6816 = vmatpush3.msra.mxu0 %v8048_v62  ;;  %6821 = vmatpush3.xpose.msk.msra.mxu1 %vm425_vm2, %v8058_v51  ;;  %v3951_v36 = vadd.f32 %v3950_v30, %v3949_v9  ;;  %v4959_v62 = vpop.permute.xlu1 %4958  ;;  %v5039_v51 = vpop.permute.xlu0 %5038 }
 0x81d   : > { %6817 = vmatprep.mubr.msk.f32.mxu0 %vm7280_vm1, %v7279_v12  ;;  %6822 = vmatprep.mubr.msk.f32.mxu1 %vm7280_vm1, %v7279_v12 }
 0x81e   : > { %6825 = vmatprep.subr.mxu0 %v7279_v12  ;;  %6830 = vmatprep.subr.mxu1 %v7279_v12  ;;  %v3959_v22 = vmul.f32 0.125, %v3951_v36 }
 0x81f   : > { %6823 = vmatmul.mubr.msk.f32.vlgmr.msra.gmra.mxu1 %vm425_vm2, %v8065_v17 }
 0x820   : > { %6818 = vmatmul.mubr.msk.f32.vlgmr.msra.gmra.mxu0 %vm425_vm2, %v3959_v22  ;;  %6831 = vmatpush3.xpose.msk.msra.mxu1 %vm425_vm2, %v8074_v35  ;;  %v5037_v17 = vpop.permute.xlu0 %5036 }
 0x821   : > { %6826 = vmatpush3.xpose.msk.msra.mxu0 %vm425_vm2, %v8061_v63  ;;  %6827 = vmatprep.mubr.msk.f32.mxu0 %vm7280_vm1, %v7279_v12  ;;  %v5117_v63 = vpop.permute.xlu1 %5116 }
 0x822   : > { %6832 = vmatprep.mubr.msk.f32.mxu1 %vm7280_vm1, %v7279_v12  ;;  %6835 = vmatprep.subr.mxu0 %v7279_v12 }
 0x823   : > { %6840 = vmatprep.subr.mxu1 %v7279_v12  ;;  %6833 = vmatmul.mubr.msk.f32.vlgmr.msra.gmra.mxu1 %vm425_vm2, %v4725_v41 }
 0x824   : > { %6828 = vmatmul.mubr.msk.f32.vlgmr.msra.gmra.mxu0 %vm425_vm2, %v8071_v46  ;;  %6841 = vmatpush3.xpose.msk.msra.mxu1 %vm425_vm2, %v4883_v31 }
 0x825   : > { %6836 = vmatpush3.xpose.msk.msra.mxu0 %vm425_vm2, %v8083_v44  ;;  %6837 = vmatprep.mubr.msk.f32.mxu0 %vm7280_vm1, %v7279_v12  ;;  %v5115_v46 = vpop.permute.xlu1 %5114 }
 0x826   : > { %6842 = vmatprep.mubr.msk.f32.mxu1 %vm7280_vm1, %v7279_v12  ;;  %6845 = vmatprep.subr.mxu0 %v7279_v12 }
 0x827   : > { %6850 = vmatprep.subr.mxu1 %v7279_v12  ;;  %6843 = vmatmul.mubr.msk.f32.vlgmr.msra.gmra.mxu1 %vm425_vm2, %v4881_v32 }
 0x828   : > { %6838 = vmatmul.mubr.msk.f32.vlgmr.msra.gmra.mxu0 %vm425_vm2, %v4803_v56  ;;  %6851 = vmatpush3.xpose.msk.msra.mxu1 %vm425_vm2, %v5039_v51 }
 0x829   : > { %6846 = vmatpush3.xpose.msk.msra.mxu0 %vm425_vm2, %v4961_v21  ;;  %6847 = vmatprep.mubr.msk.f32.mxu0 %vm7280_vm1, %v7279_v12 }
 0x82a   : > { %6852 = vmatprep.mubr.msk.f32.mxu1 %vm7280_vm1, %v7279_v12  ;;  %6855 = vmatprep.subr.mxu0 %v7279_v12 }
 0x82b   : > { %6853 = vmatmul.mubr.msk.f32.vlgmr.msra.gmra.mxu1 %vm425_vm2, %v5037_v17  ;;  %6860 = vmatprep.subr.mxu1 %v7279_v12 }
 0x82c   : > { %6848 = vmatmul.mubr.msk.f32.vlgmr.msra.gmra.mxu0 %vm425_vm2, %v4959_v62  ;;  %6862 = vmatprep.mubr.msk.f32.mxu1 %vm7280_vm1, %v7279_v12 }
 0x82d   : > { %6856 = vmatpush3.xpose.msk.msra.mxu0 %vm425_vm2, %v5117_v63  ;;  %6857 = vmatprep.mubr.msk.f32.mxu0 %vm7280_vm1, %v7279_v12 }
 0x82e   : > { %6865 = vmatprep.subr.mxu0 %v7279_v12 }
 0x830   : > { %6858 = vmatmul.mubr.msk.f32.vlgmr.msra.gmra.mxu0 %vm425_vm2, %v5115_v46 }
 0x831   : > { %6867 = vmatprep.mubr.msk.f32.mxu0 %vm7280_vm1, %v7279_v12 }
 0x8cd   : > { %v8162_v35 = vpop.f32.mrf.mxu1 }
 0x8cf   : > { %v6784_v38 = vpop.f32.mrf.mxu1 }
 0x8d1   : > { %v8164_v48 = vpop.f32.mrf.mxu1 }
 0x8d2   : > { %v8166_v33 = vpop.f32.mrf.mxu0 }
 0x8d3   : > { %v6794_v49 = vpop.f32.mrf.mxu1 }
 0x8d4   : > { %v6789_v11 = vpop.f32.mrf.mxu0 }
 0x8d6   : > { %v8168_v34 = vpop.f32.mrf.mxu1 }
 0x8d7   : > { %v8170_v44 = vpop.f32.mrf.mxu0 }
 0x8d8   : > { %v6804_v60 = vpop.f32.mrf.mxu1 }
 0x8d9   : > { %v6799_v2 = vpop.f32.mrf.mxu0 }
 0x8db   : > { %v8172_v39 = vpop.f32.mrf.mxu0  ;;  %v8174_v41 = vpop.f32.mrf.mxu1 }
 0x8dd   : > { %v6809_v43 = vpop.f32.mrf.mxu0  ;;  %v6814_v13 = vpop.f32.mrf.mxu1 }
 0x8df   : > { %v4642_v14 = vpop.f32.mrf.mxu1 }
 0x8e0   : > { %v8176_v40 = vpop.f32.mrf.mxu0  ;;  %v5192_v55 = vsel %vm425_vm2, %v4642_v14, -inf }
 0x8e1   : > { %5193 = vmax.xlane.f32.xlu0 %v5192_v55  ;;  %v6824_v42 = vpop.f32.mrf.mxu1 }
 0x8e2   : > { %v6819_v58 = vpop.f32.mrf.mxu0 }
 0x8e3   : > { %v4798_v50 = vpop.f32.mrf.mxu1 }
 0x8e4   : > { %v4720_v47 = vpop.f32.mrf.mxu0  ;;  %v5198_v8 = vsel %vm425_vm2, %v4798_v50, -inf }
 0x8e5   : > { %v5195_v56 = vsel %vm425_vm2, %v4720_v47, -inf  ;;  %5199 = vmax.xlane.f32.xlu0 %v5198_v8  ;;  %v6834_v45 = vpop.f32.mrf.mxu1 }
 0x8e6   : > { %5196 = vmax.xlane.f32.xlu1 %v5195_v56  ;;  %v6829_v5 = vpop.f32.mrf.mxu0 }
 0x8e7   : > { %v4954_v31 = vpop.f32.mrf.mxu1 }
 0x8e8   : > { %v4876_v9 = vpop.f32.mrf.mxu0  ;;  %v5204_v15 = vsel %vm425_vm2, %v4954_v31, -inf }
 0x8e9   : > { %v5201_v25 = vsel %vm425_vm2, %v4876_v9, -inf  ;;  %v6844_v30 = vpop.f32.mrf.mxu1 }
 0x8ea   : > { %v6839_v36 = vpop.f32.mrf.mxu0  ;;  %5202 = vmax.xlane.f32.xlu0 %v5201_v25  ;;  %5205 = vmax.xlane.f32.xlu1 %v5204_v15 }
 0x8eb   : > { %v5110_v21 = vpop.f32.mrf.mxu1 }
 0x8ec   : > { %v5032_v32 = vpop.f32.mrf.mxu0  ;;  %v5210_v22 = vsel %vm425_vm2, %v5110_v21, -inf }
 0x8ed   : > { %v5207_v62 = vsel %vm425_vm2, %v5032_v32, -inf  ;;  %v6854_v51 = vpop.f32.mrf.mxu1 }
 0x8ee   : > { %v6849_v63 = vpop.f32.mrf.mxu0  ;;  %5208 = vmax.xlane.f32.xlu0 %v5207_v62  ;;  %5211 = vmax.xlane.f32.xlu1 %v5210_v22 }
 0x8f0   : > { %v5188_v17 = vpop.f32.mrf.mxu0 }
 0x8f1   : > { %v5213_v46 = vsel %vm425_vm2, %v5188_v17, -inf }
 0x8f2   : > { %v6859_v38 = vpop.f32.mrf.mxu0  ;;  %5214 = vmax.xlane.f32.xlu0 %v5213_v46 }
 0x8ff   : > { %5344 = vrot.lane.b32.xlu1 %v7501_v16, %s7291_s8 }
 0x96a   : > { %v5194_v49 = vpop.xlane.xlu0 %5193 }
 0x96b   : > { %v5216_v11 = vsub.f32 %v4642_v14, %v5194_v49 }
 0x96d   : > { %v5224_v60 = vmul.f32 1.442695, %v5216_v11 }
 0x96e   : > { %v5200_v2 = vpop.xlane.xlu0 %5199 }
 0x96f   : > { %7092 = vpow2.f32 %v5224_v60  ;;  %v5197_v43 = vpop.xlane.xlu1 %5196  ;;  %v5218_v13 = vsub.f32 %v4798_v50, %v5200_v2 }
 0x970   : > { %v5217_v55 = vsub.f32 %v4720_v47, %v5197_v43 }
 0x971   : > { %v5228_v42 = vmul.f32 1.442695, %v5218_v13 }
 0x972   : > { %v5226_v58 = vmul.f32 1.442695, %v5217_v55 }
 0x973   : > { %7094 = vpow2.f32 %v5228_v42  ;;  %v5206_v8 = vpop.xlane.xlu1 %5205  ;;  %v5203_v56 = vpop.xlane.xlu0 %5202 }
 0x974   : > { %7096 = vpow2.f32 %v5226_v58  ;;  %v5220_v45 = vsub.f32 %v4954_v31, %v5206_v8  ;;  %v5219_v5 = vsub.f32 %v4876_v9, %v5203_v56 }
 0x976   : > { %v5232_v15 = vmul.f32 1.442695, %v5220_v45  ;;  %v5230_v25 = vmul.f32 1.442695, %v5219_v5 }
 0x977   : > { %v5212_v30 = vpop.xlane.xlu1 %5211  ;;  %v5209_v16 = vpop.xlane.xlu0 %5208 }
 0x978   : > { %7098 = vpow2.f32 %v5232_v15  ;;  %v5222_v14 = vsub.f32 %v5110_v21, %v5212_v30  ;;  %v5221_v36 = vsub.f32 %v5032_v32, %v5209_v16 }
 0x979   : > { %7100 = vpow2.f32 %v5230_v25 }
 0x97a   : > { %v5236_v22 = vmul.f32 1.442695, %v5222_v14  ;;  %v5234_v62 = vmul.f32 1.442695, %v5221_v36 }
 0x97b   : > { %v5345_v50 = vpop.permute.xlu1 %5344  ;;  %v5215_v47 = vpop.xlane.xlu0 %5214 }
 0x97c   : > { %v8188_v51 = vpop.eup %7092  ;;  %7102 = vpow2.f32 %v5236_v22  ;;  %v5223_v63 = vsub.f32 %v5188_v17, %v5215_v47  ;;  %6861 = vmatpush3.msra.mxu1 %v5345_v50 }
 0x97d   : > { %7104 = vpow2.f32 %v5234_v62  ;;  %v5240_v31 = vsel %vm425_vm2, %v8188_v51, 0.0  ;;  %6870 = vmatprep.subr.mxu1 %v7279_v12 }
 0x97e   : > { %v5238_v9 = vmul.f32 1.442695, %v5223_v63  ;;  %5241 = vadd.xlane.f32.xlu1 %v5240_v31 }
 0x980   : > { %v8193_v21 = vpop.eup %7094  ;;  %7106 = vpow2.f32 %v5238_v9 }
 0x981   : > { %v8195_v32 = vpop.eup %7096  ;;  %v5246_v46 = vsel %vm425_vm2, %v8193_v21, 0.0 }
 0x982   : > { %v5243_v17 = vsel %vm425_vm2, %v8195_v32, 0.0  ;;  %5247 = vadd.xlane.f32.xlu1 %v5246_v46 }
 0x983   : > { %5244 = vadd.xlane.f32.xlu0 %v5243_v17 }
 0x985   : > { %v8201_v38 = vpop.eup %7098 }
 0x986   : > { %v8203_v49 = vpop.eup %7100  ;;  %v5252_v11 = vsel %vm425_vm2, %v8201_v38, 0.0 }
 0x987   : > { %5253 = vadd.xlane.f32.xlu1 %v5252_v11  ;;  %v5249_v60 = vsel %vm425_vm2, %v8203_v49, 0.0 }
 0x988   : > { %5250 = vadd.xlane.f32.xlu0 %v5249_v60 }
 0x989   : > { %v8209_v2 = vpop.eup %7102 }
 0x98a   : > { %v8211_v43 = vpop.eup %7104  ;;  %v5258_v13 = vsel %vm425_vm2, %v8209_v2, 0.0 }
 0x98b   : > { %5259 = vadd.xlane.f32.xlu1 %v5258_v13  ;;  %v5255_v55 = vsel %vm425_vm2, %v8211_v43, 0.0 }
 0x98c   : > { %5256 = vadd.xlane.f32.xlu0 %v5255_v55 }
 0x98d   : > { %v8217_v42 = vpop.eup %7106 }
 0x98e   : > { %v5261_v58 = vsel %vm425_vm2, %v8217_v42, 0.0 }
 0x990   : > { %5262 = vadd.xlane.f32.xlu0 %v5261_v58 }
 0x99c   : > { %5496 = vrot.lane.b32.xlu1 %v7506_v20, %s7291_s8 }
 0x9a0   : > { %5572 = vrot.lane.b32.xlu1 %v7510_v23, %s7291_s8 }
 0x9a4   : > { %5724 = vrot.lane.b32.xlu1 %v7515_v26, %s7291_s8 }
 0x9a6   : > { %5420 = vrot.lane.b32.xlu0 %v7504_v19, %s7291_s8 }
 0x9a8   : > { %5876 = vrot.lane.b32.xlu1 %v7521_v29, %s7291_s8 }
 0x9aa   : > { %5648 = vrot.lane.b32.xlu0 %v7512_v24, %s7291_s8 }
 0x9ac   : > { %5964 = vrot.lane.b32.xlu1 %v7962_v0, %s7292_s29 }
 0x9ae   : > { %5800 = vrot.lane.b32.xlu0 %v7518_v28, %s7291_s8  ;;  %s7208_s8 = sshll.u32 %s7295_s22, 4  ;;  %s7209_s8 = int_to_ptr.vmem [resolvable:$false] %s7208_s8 }
 0x9af   : > { %p7211_p13 = scmp.lt.s32.totalorder %s6202_s14, %s7209_s8 }
 0x9b0   : > { %5960 = vrot.lane.b32.xlu1 %v7960_v18, %s7292_s29 }
 0x9b2   : > { %5962 = vrot.lane.b32.xlu0 %v7958_v53, %s7292_s29 }
 0x9b4   : > { %5996 = vrot.lane.b32.xlu1 %v8164_v48, %s7293_s6 }
 0x9b6   : > { %5994 = vrot.lane.b32.xlu0 %v8166_v33, %s7293_s6 }
 0x9b8   : > { %5968 = vrot.lane.b32.xlu1 %v7964_v1, %s7292_s29 }
 0x9ba   : > { %5966 = vrot.lane.b32.xlu0 %v7966_v3, %s7292_s29 }
 0x9bc   : > { %5998 = vrot.lane.b32.xlu1 %v8170_v44, %s7293_s6 }
 0x9be   : > { %5992 = vrot.lane.b32.xlu0 %v8162_v35, %s7293_s6 }
 0x9c0   : > { %5970 = vrot.lane.b32.xlu1 %v7968_v4, %s7292_s29 }
 0x9c2   : > { %6000 = vrot.lane.b32.xlu0 %v8168_v34, %s7293_s6 }
 0x9c4   : > { %5972 = vrot.lane.b32.xlu1 %v7970_v7, %s7292_s29 }
 0x9c6   : > { %6002 = vrot.lane.b32.xlu0 %v8172_v39, %s7293_s6 }
 0x9c8   : > { %6004 = vrot.lane.b32.xlu1 %v8174_v41, %s7293_s6 }
 0x9ca   : > { %5974 = vrot.lane.b32.xlu0 %v7972_v27, %s7292_s29  ;;  %s7210_s29 = scalar_lea.vmem %s7209_s8, 256 }
 0x9cb   : > { %p7212_p0 = scmp.lt.s32.totalorder %s7210_s29, %s7204_s16 }
 0x9cc   : > { %6006 = vrot.lane.b32.xlu1 %v8176_v40, %s7293_s6 }
 0x9cd   : > { %p7213_p10 = por %p7212_p0, %p7211_p13 }
 0x9cf   : > { %p7214_p3 = pnand %p7213_p10, %p7207_p12 }
 0xa07   : > { %v5242_v19 = vpop.xlane.xlu1 %5241 }
 0xa08   : > { %7108 = vrcp.f32 %v5242_v19 }
 0xa0b   : > { %v5248_v20 = vpop.xlane.xlu1 %5247 }
 0xa0c   : > { %7110 = vrcp.f32 %v5248_v20  ;;  %v5245_v23 = vpop.xlane.xlu0 %5244 }
 0xa0d   : > { %7112 = vrcp.f32 %v5245_v23 }
 0xa10   : > { %v5254_v24 = vpop.xlane.xlu1 %5253 }
 0xa11   : > { %7114 = vrcp.f32 %v5254_v24  ;;  %v5251_v26 = vpop.xlane.xlu0 %5250 }
 0xa12   : > { %7116 = vrcp.f32 %v5251_v26 }
 0xa14   : > { %v5260_v28 = vpop.xlane.xlu1 %5259 }
 0xa15   : > { %v7109_v29 = vpop.eup %7108  ;;  %7118 = vrcp.f32 %v5260_v28  ;;  %v5257_v53 = vpop.xlane.xlu0 %5256 }
 0xa16   : > { %v5265_v18 = vmul.f32 %v7109_v29, %v8188_v51  ;;  %7120 = vrcp.f32 %v5257_v53 }
 0xa18   : > { %v5280_v0 = vsel %vm425_vm2, %v5265_v18, 0.0  ;;  %v5497_v9 = vpop.permute.xlu1 %5496 }
 0xa19   : > { %v7111_v1 = vpop.eup %7110  ;;  %v5281_v3 = vrot.slane %v5280_v0, 4  ;;  %v5263_v4 = vpop.xlane.xlu0 %5262 }
 0xa1a   : > { %v7113_v7 = vpop.eup %7112  ;;  %v5269_v27 = vmul.f32 %v7111_v1, %v8193_v21  ;;  %7122 = vrcp.f32 %v5263_v4 }
 0xa1b   : > { %v5267_v35 = vmul.f32 %v7113_v7, %v8195_v32  ;;  %v5282_v48 = vadd.f32 %v5281_v3, %v5280_v0 }
 0xa1c   : > { %v5294_v33 = vsel %vm425_vm2, %v5269_v27, 0.0  ;;  %v5573_v53 = vpop.permute.xlu1 %5572 }
 0xa1d   : > { %v5295_v34 = vrot.slane %v5294_v33, 4  ;;  %v5287_v44 = vsel %vm425_vm2, %v5267_v35, 0.0  ;;  %v5421_v39 = vpop.permute.xlu0 %5420  ;;  %v5283_v41 = vrot.slane %v5282_v48, 2 }
 0xa1e   : > { %v7115_v40 = vpop.eup %7114  ;;  %v5288_v8 = vrot.slane %v5287_v44, 4  ;;  %6866 = vmatpush3.msra.mxu0 %v5421_v39 }
 0xa1f   : > { %v7117_v56 = vpop.eup %7116  ;;  %v5273_v45 = vmul.f32 %v7115_v40, %v8201_v38  ;;  %v5284_v5 = vadd.f32 %v5283_v41, %v5282_v48  ;;  %6875 = vmatprep.subr.mxu0 %v7279_v12  ;;  %v5296_v15 = vadd.f32 %v5295_v34, %v5294_v33 }
 0xa20   : > { %v5271_v25 = vmul.f32 %v7117_v56, %v8203_v49  ;;  %v5289_v30 = vadd.f32 %v5288_v8, %v5287_v44  ;;  %v5725_v56 = vpop.permute.xlu1 %5724 }
 0xa21   : > { %v5308_v16 = vsel %vm425_vm2, %v5273_v45, 0.0  ;;  %v5285_v14 = vrot.slane %v5284_v5, 1  ;;  %v5297_v36 = vrot.slane %v5296_v15, 2  ;;  %v5649_v4 = vpop.permute.xlu0 %5648 }
 0xa22   : > { %v7119_v22 = vpop.eup %7118  ;;  %v5309_v62 = vrot.slane %v5308_v16, 4  ;;  %v5301_v50 = vsel %vm425_vm2, %v5271_v25, 0.0  ;;  %v5290_v47 = vrot.slane %v5289_v30, 2 }
 0xa23   : > { %v7121_v51 = vpop.eup %7120  ;;  %v5302_v63 = vrot.slane %v5301_v50, 4  ;;  %v5277_v31 = vmul.f32 %v7119_v22, %v8209_v2  ;;  %v5286_v21 = vadd.f32 %v5285_v14, %v5284_v5  ;;  %v5298_v32 = vadd.f32 %v5297_v36, %v5296_v15 }
 0xa24   : > { %v5275_v46 = vmul.f32 %v7121_v51, %v8211_v43  ;;  %v5291_v17 = vadd.f32 %v5290_v47, %v5289_v30  ;;  %v5310_v38 = vadd.f32 %v5309_v62, %v5308_v16  ;;  %v5877_v47 = vpop.permute.xlu1 %5876 }
 0xa25   : > { %v5322_v49 = vsel %vm425_vm2, %v5277_v31, 0.0  ;;  %v5336_v11 = vmul.f32 0.125, %v5286_v21  ;;  %v5299_v60 = vrot.slane %v5298_v32, 1  ;;  %v5303_v13 = vadd.f32 %v5302_v63, %v5301_v50  ;;  %v5801_v25 = vpop.permute.xlu0 %5800 }
 0xa26   : > { %v5315_v55 = vsel %vm425_vm2, %v5275_v46, 0.0  ;;  %v5292_v58 = vrot.slane %v5291_v17, 1  ;;  %v5311_v19 = vrot.slane %v5310_v38, 2  ;;  %v5323_v23 = vrot.slane %v5322_v49, 4 }
 0xa27   : > { %v7123_v20 = vpop.eup %7122  ;;  %v5316_v24 = vrot.slane %v5315_v55, 4  ;;  %6863 = vmatmul.mubr.msk.f32.vlgmr.msra.gmra.mxu1 %vm425_vm2, %v5336_v11  ;;  %v5300_v2 = vadd.f32 %v5299_v60, %v5298_v32  ;;  %v5304_v26 = vrot.slane %v5303_v13, 2 }
 0xa28   : > { %v5279_v43 = vmul.f32 %v7123_v20, %v8217_v42  ;;  %6871 = vmatpush3.msra.mxu1 %v5497_v9  ;;  %6872 = vmatprep.mubr.msk.f32.mxu1 %vm7280_vm1, %v7279_v12  ;;  %v5293_v28 = vadd.f32 %v5292_v58, %v5291_v17  ;;  %v5312_v29 = vadd.f32 %v5311_v19, %v5310_v38  ;;  %v6075_v19 = vld [vmem:[#allocation7 + $0x8] sm:$0xff]  ;;  %v6074_v20 = vld [vmem:[#allocation7] sm:$0xff] }
 0xa29   : > { %6880 = vmatprep.subr.mxu1 %v7279_v12  ;;  %v5338_v18 = vmul.f32 0.125, %v5300_v2  ;;  %v5305_v0 = vadd.f32 %v5304_v26, %v5303_v13  ;;  %v5317_v1 = vadd.f32 %v5316_v24, %v5315_v55  ;;  %v5324_v33 = vadd.f32 %v5323_v23, %v5322_v49  ;;  %v6077_v49 = vld [vmem:[#allocation7 + $0x18] sm:$0xff]  ;;  %v6076_v55 = vld [vmem:[#allocation7 + $0x10] sm:$0xff] }
 0xa2a   : > { %v5329_v3 = vsel %vm425_vm2, %v5279_v43, 0.0  ;;  %v5337_v7 = vmul.f32 0.125, %v5293_v28  ;;  %v5313_v27 = vrot.slane %v5312_v29, 1 }
 0xa2b   : > { %v5330_v35 = vrot.slane %v5329_v3, 4  ;;  %6873 = vmatmul.mubr.msk.f32.vlgmr.msra.gmra.mxu1 %vm425_vm2, %v5338_v18  ;;  %v5306_v42 = vrot.slane %v5305_v0, 1  ;;  %v5318_v48 = vrot.slane %v5317_v1, 2  ;;  %v5325_v41 = vrot.slane %v5324_v33, 2 }
 0xa2c   : > { %6868 = vmatmul.mubr.msk.f32.vlgmr.msra.gmra.mxu0 %vm425_vm2, %v5337_v7  ;;  %6881 = vmatpush3.msra.mxu1 %v5649_v4  ;;  %v5314_v34 = vadd.f32 %v5313_v27, %v5312_v29  ;;  %v5965_v29 = vpop.permute.xlu1 %5964 }
 0xa2d   : > { %6876 = vmatpush3.msra.mxu0 %v5573_v53  ;;  %6877 = vmatprep.mubr.msk.f32.mxu0 %vm7280_vm1, %v7279_v12  ;;  %v5307_v44 = vadd.f32 %v5306_v42, %v5305_v0  ;;  %v5319_v39 = vadd.f32 %v5318_v48, %v5317_v1  ;;  %v5331_v8 = vadd.f32 %v5330_v35, %v5329_v3  ;;  %v5963_v53 = vpop.permute.xlu0 %5962 }
 0xa2e   : > { %6882 = vmatprep.mubr.msk.f32.mxu1 %vm7280_vm1, %v7279_v12  ;;  %6885 = vmatprep.subr.mxu0 %v7279_v12  ;;  %v5340_v40 = vmul.f32 0.125, %v5314_v34  ;;  %v5326_v15 = vadd.f32 %v5325_v41, %v5324_v33  ;;  %v6049_v41 = vsel %vm425_vm2, %v7754_v54, %v5963_v53 }
 0xa2f   : > { %6890 = vmatprep.subr.mxu1 %v7279_v12  ;;  %v5339_v45 = vmul.f32 0.125, %v5307_v44  ;;  %v5320_v5 = vrot.slane %v5319_v39, 1  ;;  %v5332_v30 = vrot.slane %v5331_v8, 2 }
 0xa30   : > { %6883 = vmatmul.mubr.msk.f32.vlgmr.msra.gmra.mxu1 %vm425_vm2, %v5340_v40  ;;  %v5327_v14 = vrot.slane %v5326_v15, 1  ;;  %v5961_v18 = vpop.permute.xlu1 %5960 }
 0xa31   : > { %6878 = vmatmul.mubr.msk.f32.vlgmr.msra.gmra.mxu0 %vm425_vm2, %v5339_v45  ;;  %6891 = vmatpush3.msra.mxu1 %v5801_v25  ;;  %v5321_v16 = vadd.f32 %v5320_v5, %v5319_v39  ;;  %v5333_v36 = vadd.f32 %v5332_v30, %v5331_v8  ;;  %v5995_v0 = vpop.permute.xlu0 %5994  ;;  %v6050_v8 = vsel %vm425_vm2, %v7756_v37, %v5965_v29 }
 0xa32   : > { %6886 = vmatpush3.msra.mxu0 %v5725_v56  ;;  %6887 = vmatprep.mubr.msk.f32.mxu0 %vm7280_vm1, %v7279_v12  ;;  %v5328_v62 = vadd.f32 %v5327_v14, %v5326_v15  ;;  %v6058_v56 = vsel %vm6056_vm3, %v6049_v41, %v5995_v0 }
 0xa33   : > { %6892 = vmatprep.mubr.msk.f32.mxu1 %vm7280_vm1, %v7279_v12  ;;  %6895 = vmatprep.subr.mxu0 %v7279_v12  ;;  %v5341_v22 = vmul.f32 0.125, %v5321_v16  ;;  %v5334_v50 = vrot.slane %v5333_v36, 1 }
 0xa34   : > { %6900 = vmatprep.subr.mxu1 %v7279_v12  ;;  %v5342_v51 = vmul.f32 0.125, %v5328_v62  ;;  %v5997_v1 = vpop.permute.xlu1 %5996 }
 0xa35   : > { %6888 = vmatmul.mubr.msk.f32.vlgmr.msra.gmra.mxu0 %vm425_vm2, %v5341_v22  ;;  %v5335_v63 = vadd.f32 %v5334_v50, %v5333_v36  ;;  %v5967_v3 = vpop.permute.xlu0 %5966  ;;  %v6059_v45 = vsel %vm6056_vm3, %v6050_v8, %v5997_v1  ;;  %v6048_v22 = vsel %vm425_vm2, %v7752_v52, %v5961_v18 }
 0xa36   : > { %6896 = vmatpush3.msra.mxu0 %v5877_v47  ;;  %6897 = vmatprep.mubr.msk.f32.mxu0 %vm7280_vm1, %v7279_v12  ;;  %v6051_v25 = vsel %vm425_vm2, %v7758_v57, %v5967_v3 }
 0xa37   : > { %6893 = vmatmul.mubr.msk.f32.vlgmr.msra.gmra.mxu1 %vm425_vm2, %v5342_v51  ;;  %v5343_v31 = vmul.f32 0.125, %v5335_v63 }
 0xa38   : > { %6908 = vmatprep.mubr.msk.f32.mxu1 %vm7280_vm1, %v7279_v12  ;;  %6901 = vmatpush3.msra.mxu1 %v6077_v49  ;;  %v5969_v4 = vpop.permute.xlu1 %5968 }
 0xa39   : > { %6898 = vmatmul.mubr.msk.f32.vlgmr.msra.gmra.mxu0 %vm425_vm2, %v5343_v31  ;;  %6902 = vmatprep.subr.mxu1 %v7279_v12  ;;  %v6052_v57 = vsel %vm425_vm2, %v7767_v6, %v5969_v4 }
 0xa3a   : > { %6903 = vmatpush3.msra.mxu1 %v6076_v55 }
 0xa3b   : > { %6904 = vmatprep.subr.mxu1 %v7279_v12 }
 0xa3c   : > { %6905 = vmatpush3.msra.mxu1 %v6075_v19  ;;  %v5999_v7 = vpop.permute.xlu1 %5998 }
 0xa3d   : > { %6906 = vmatprep.subr.mxu1 %v7279_v12  ;;  %v5993_v12 = vpop.permute.xlu0 %5992  ;;  %v6060_v16 = vsel %vm6056_vm3, %v6051_v25, %v5999_v7 }
 0xa3e   : > { %6907 = vmatpush3.msra.mxu1 %v6074_v20  ;;  %v6057_v47 = vsel %vm6056_vm3, %v6048_v22, %v5993_v12 }
 0xa40   : > { %v5971_v35 = vpop.permute.xlu1 %5970 }
 0xa41   : > { %v6001_v27 = vpop.permute.xlu0 %6000  ;;  %v6053_v14 = vsel %vm425_vm2, %v7760_v59, %v5971_v35 }
 0xa42   : > { %v6061_v63 = vsel %vm6056_vm3, %v6052_v57, %v6001_v27 }
 0xa44   : > { %v5973_v48 = vpop.permute.xlu1 %5972 }
 0xa45   : > { %v6003_v42 = vpop.permute.xlu0 %6002  ;;  %v6054_v6 = vsel %vm425_vm2, %v7771_v10, %v5973_v48 }
 0xa46   : > { %v6062_v59 = vsel %vm6056_vm3, %v6053_v14, %v6003_v42 }
 0xa48   : > { %v6005_v34 = vpop.permute.xlu1 %6004 }
 0xa49   : > { %v5975_v33 = vpop.permute.xlu0 %5974 }
 0xa4c   : > { %v6007_v39 = vpop.permute.xlu1 %6006 }
 0xae7   : > { %v5416_v9 = vpop.f32.mrf.mxu1 }
 0xae8   : > { %6024 = vrot.lane.b32.xlu1 %v5416_v9, %s7294_s24 }
 0xae9   : > { %v6864_v21 = vpop.f32.mrf.mxu1 }
 0xaeb   : > { %v5568_v32 = vpop.f32.mrf.mxu1 }
 0xaec   : > { %v5492_v46 = vpop.f32.mrf.mxu0 }
 0xaed   : > { %6026 = vrot.lane.b32.xlu0 %v5492_v46, %s7294_s24  ;;  %v6874_v17 = vpop.f32.mrf.mxu1  ;;  %v6055_v46 = vsel %vm425_vm2, %v7762_v61, %v5975_v33 }
 0xaee   : > { %v6869_v38 = vpop.f32.mrf.mxu0  ;;  %v6064_v49 = vsel %vm6056_vm3, %v6055_v46, %v6007_v39 }
 0xaf0   : > { %v5720_v11 = vpop.f32.mrf.mxu1 }
 0xaf1   : > { %v5644_v60 = vpop.f32.mrf.mxu0  ;;  %6028 = vrot.lane.b32.xlu0 %v5568_v32, %s7294_s24  ;;  %6032 = vrot.lane.b32.xlu1 %v5720_v11, %s7294_s24 }
 0xaf2   : > { %v6884_v13 = vpop.f32.mrf.mxu1 }
 0xaf3   : > { %v6879_v58 = vpop.f32.mrf.mxu0  ;;  %v6063_v13 = vsel %vm6056_vm3, %v6054_v6, %v6005_v34 }
 0xaf5   : > { %v5796_v23 = vpop.f32.mrf.mxu0  ;;  %6030 = vrot.lane.b32.xlu0 %v5644_v60, %s7294_s24 }
 0xaf7   : > { %v5872_v24 = vpop.f32.mrf.mxu1  ;;  %v6889_v2 = vpop.f32.mrf.mxu0 }
 0xaf9   : > { %v6894_v26 = vpop.f32.mrf.mxu1  ;;  %6034 = vrot.lane.b32.xlu0 %v5796_v23, %s7294_s24  ;;  %v5948_v43 = vpop.f32.mrf.mxu0 }
 0xafa   : > { %6038 = vrot.lane.b32.xlu1 %v5948_v43, %s7294_s24  ;;  %v6408_v43 = vld [vmem:[%s8389_s4] ss:$0 sm:$0xff] }
 0xafb   : > { %v6899_v28 = vpop.f32.mrf.mxu0 }
 0xafd   : > { %6036 = vrot.lane.b32.xlu0 %v5872_v24, %s7294_s24 }
 0xb5a   : > { %v6025_v5 = vpop.permute.xlu1 %6024 }
 0xb5b   : > { %v6066_v31 = vsel %vm6065_vm4, %v6057_v47, %v6025_v5 }
 0xb5f   : > { %v6027_v44 = vpop.permute.xlu0 %6026 }
 0xb60   : > { %v6067_v15 = vsel %vm6065_vm4, %v6058_v56, %v6027_v44 }
 0xb61   : > { %v6093_v37 = vrot.slane %v6067_v15, 7 }
 0xb63   : > { %v6029_v40 = vpop.permute.xlu0 %6028  ;;  %v6033_v62 = vpop.permute.xlu1 %6032  ;;  %v6095_v21 = vsel %vm6094_vm5, %v6093_v37, %v6066_v31 }
 0xb64   : > { %v6068_v30 = vsel %vm6065_vm4, %v6059_v45, %v6029_v40  ;;  %v6070_v52 = vsel %vm6065_vm4, %v6061_v63, %v6033_v62 }
 0xb65   : > { %v6096_v50 = vrot.slane %v6068_v30, 6  ;;  %v6102_v55 = vrot.slane %v6070_v52, 4 }
 0xb67   : > { %v6031_v54 = vpop.permute.xlu0 %6030  ;;  %v6098_v17 = vsel %vm6097_vm6, %v6096_v50, %v6095_v21 }
 0xb68   : > { %v6069_v36 = vsel %vm6065_vm4, %v6060_v16, %v6031_v54 }
 0xb69   : > { %v6099_v51 = vrot.slane %v6069_v36, 5 }
 0xb6b   : > { %v6035_v9 = vpop.permute.xlu0 %6034  ;;  %v6101_v11 = vsel %vm6100_vm7, %v6099_v51, %v6098_v17 }
 0xb6c   : > { %v6071_v32 = vsel %vm6065_vm4, %v6062_v59, %v6035_v9  ;;  %v6039_v38 = vpop.permute.xlu1 %6038  ;;  %v6104_v61 = vsel %vm6103_vm8, %v6102_v55, %v6101_v11 }
 0xb6d   : > { %v6105_v60 = vrot.slane %v6071_v32, 3  ;;  %v6073_v58 = vsel %vm6065_vm4, %v6064_v49, %v6039_v38 }
 0xb6e   : > { %v6111_v23 = vrot.slane %v6073_v58, 1 }
 0xb6f   : > { %v6037_v19 = vpop.permute.xlu0 %6036  ;;  %v6107_v24 = vsel %vm6106_vm9, %v6105_v60, %v6104_v61 }
 0xb70   : > { %v6072_v10 = vsel %vm6065_vm4, %v6063_v13, %v6037_v19 }
 0xb71   : > { %v6108_v20 = vrot.slane %v6072_v10, 2 }
 0xb73   : > { %v6110_v2 = vsel %vm6109_vm10, %v6108_v20, %v6107_v24 }
 0xb74   : > { %v6113_v26 = vsel %vm6112_vm11, %v6111_v23, %v6110_v2 }
 0xb75   : > { %6909 = vmatmul.mubr.msk.f32.vlgmr.msra.gmra.mxu1 %vm292_vm0, %v6113_v26 }
 0xc35   : > { %v6182_v28 = vpop.f32.mrf.mxu1 }
 0xc36   : > { %v6183_v29 = vadd.f32 %v6408_v43, %v6182_v28 }
 0xc37   : > { %v6910_v53 = vpop.f32.mrf.mxu1 }
 0xc38   : > { %6186 = vst.msk [vmem:[%s271_s13] sm:$0xff] %vm292_vm0, %v6183_v29 }
 0xc39   : > { %7217 = shalt.err (!%p7214_p3)
}
 0xc3a   : > { %s7218_s6 = scalar_lea.hbm %s8347_s11, 128  ;;  %s7222_s26 = scalar_lea.hbm %s8390_s5, 256 }
 0xc3b   : > { %p7219_p11 = scmp.ne.s32.totalorder %s8347_s11, %s7218_s6  ;;  %p7223_p4 = scmp.lt.s32.totalorder %s8347_s11, %s8390_s5 }
 0xc3c   : > { %p7224_p6 = scmp.lt.s32.totalorder %s7222_s26, %s7218_s6 }
 0xc3d   : > { %p7220_p9 = pnand %p7219_p11, %p8407_p2 }
 0xc3e   : > { %p7225_p8 = por %p7224_p6, %p7223_p4 }
 0xc3f   : > { %p7221_p1 = pneg %p7220_p9 }
 0xc41   : > { %p7226_p5 = pnand %p7225_p8, %p7221_p1 }
 0xc43   : > { %7229 = shalt.err (!%p7226_p5)
}
 0xc44   : > { %6921 = dma.vmem_to_hbm [thread:$0]  (%p8407_p2), %s6202_s14, 128, %s8347_s11, %s6188_s17  }
 0xc45 PF: > { %s6213_s12 = sand.u32 1, %s7260_s18   ;;  %p8408_p7 = scmp.ne.s32.totalorder %s8397_s25, 0 }
 0xc46   : > { %p8409_p12 = scmp.ge.s32.totalorder %s7272_s21, 2  ;;  %s6214_s13 = scalar_lea.sflag [#allocation4], %s6213_s12 }
 0xc48   : > { %p6935_p13 = pnand %p8409_p12, %p8408_p7 }
 0xc4a   : > { %p6936_p0 = pneg %p6935_p13 }
 0xc4c   : > { %7255 = dma.done.wait (%p6936_p0), %s6214_s13, 128  }
 0xc4d   : > { %7257 = vsyncadd (%p6936_p0), %s6214_s13, 4294967168  ;;  %p19_p10 = scmp.ge.s32.totalorder %s7404_s15, 4   ;;  %s8410_s18 = smov %s7264_s19 }
 0xc4e   : > { %s8411_s19 = smov %s7268_s20  ;;  %s8412_s20 = smov %s7420_s27 }
 0xc4f   : > { %s8413_s21 = smov %s7404_s15  ;;  %21 = sbr.rel (!%p19_p10) target bundleno = 6 (0x6), region = 93 }
 0xc54   :  { %6219 = vsyncpa [#allocation3], 1 }
 0xc55   :  { %6221 = vsyncpa [#allocation3 + $0x1], 1 }
 0xc56   :  { %6222 = vsyncpa [#allocation6], 1 }
 0xc57   :  { %6223 = vsyncpa [#allocation4], 1 }
 0xc58   :  { %6225 = vsyncpa [#allocation4 + $0x1], 1 }

</bundles_post_ra>
